<compile_context>
chip_gen: v5e
topology: v5e:2x2
jax: 0.10.0
libtpu: 0.0.40
codegen_flags: <defaults>
</compile_context>

<pallas_src>
import functools
import math

import jax
import jax.numpy as jnp
from jax.experimental import pallas as pl
from jax.experimental.pallas import tpu as pltpu


NEG_INF = -1e30  # masking via jnp.where (never stacked additive -1e9's)


# ----------------------------- in-kernel helpers -----------------------------

def _layernorm(x, g, b, eps=1e-5):
    mean = jnp.mean(x, axis=-1, keepdims=True)
    c = x - mean
    var = jnp.mean(c * c, axis=-1, keepdims=True)
    return c * jax.lax.rsqrt(var + eps) * g + b


def _gelu(x):
    # TODO(synk): PyTorch nn.GELU defaults to the exact erf form; tanh approx
    # is used here (EUP-friendly, ~1e-3 divergence).
    return 0.5 * x * (1.0 + jnp.tanh(0.7978845608028654 *
                                     (x + 0.044715 * x * x * x)))


def _dot(a, b):
    """a @ b on the MXU in bf16 with f32 accumulation."""
    return jax.lax.dot_general(
        a.astype(jnp.bfloat16), b.astype(jnp.bfloat16),
        dimension_numbers=(((1,), (0,)), ((), ())),
        preferred_element_type=jnp.float32)


def _dot_nt(a, b):
    """a @ b.T (contract last dims) on the MXU in bf16, f32 accumulation."""
    return jax.lax.dot_general(
        a.astype(jnp.bfloat16), b.astype(jnp.bfloat16),
        dimension_numbers=(((1,), (1,)), ((), ())),
        preferred_element_type=jnp.float32)


def _transformer_block(x, length, causal, n_heads,
                       ln1_g, ln1_b, wqkv, bqkv, wo, bo,
                       ln2_g, ln2_b, w1, b1, w2, b2):
    """Pre-LN transformer block on a (T, H) f32 activation, fully in VMEM."""
    T, H = x.shape
    Dh = H // n_heads
    scale = 1.0 / math.sqrt(Dh)

    # --- attention ---
    xn = _layernorm(x, ln1_g, ln1_b)
    qkv = _dot(xn, wqkv) + bqkv                       # (T, 3H) f32, fused QKV
    q_all = qkv[:, :H] * scale                        # scale hoisted onto Q
    k_all = qkv[:, H:2 * H]
    v_all = qkv[:, 2 * H:]

    key_idx = jax.lax.broadcasted_iota(jnp.int32, (T, T), 1)
    valid = key_idx < length
    if causal:
        q_idx = jax.lax.broadcasted_iota(jnp.int32, (T, T), 0)
        valid = jnp.logical_and(valid, key_idx <= q_idx)

    attn_proj = jnp.zeros((T, H), jnp.float32)
    for hh in range(n_heads):                         # unrolled, no transposes
        sl = slice(hh * Dh, (hh + 1) * Dh)
        q_h, k_h, v_h = q_all[:, sl], k_all[:, sl], v_all[:, sl]
        s = _dot_nt(q_h, k_h)                         # (T, T) f32 scores
        s = jnp.where(valid, s, NEG_INF)
        m = jnp.max(s, axis=-1, keepdims=True)
        p = jnp.exp(s - m)
        denom = jnp.sum(p, axis=-1, keepdims=True)
        o_h = _dot(p, v_h) * pl.reciprocal(denom, approx=True)   # (T, Dh)
        # fold head output straight into the output projection (implicit concat)
        attn_proj = attn_proj + _dot(o_h, wo[sl, :])
    x = x + attn_proj + bo

    # --- MLP ---
    xn2 = _layernorm(x, ln2_g, ln2_b)
    hmid = _gelu(_dot(xn2, w1) + b1)
    x = x + _dot(hmid, w2) + b2
    return x


# ----------------------------- fused kernels -----------------------------

def _motion_encoder_kernel(lens_ref, motion_ref,
                           w_in_ref, b_in_ref,
                           ln1_g_ref, ln1_b_ref, wqkv_ref, bqkv_ref,
                           wo_ref, bo_ref, ln2_g_ref, ln2_b_ref,
                           w1_ref, b1_ref, w2_ref, b2_ref,
                           w_out_ref, b_out_ref, o_ref, *, n_heads):
    b = pl.program_id(0)
    length = lens_ref[b]

    x_in = motion_ref[0]                                   # (T, Dm)
    h = _dot(x_in, w_in_ref[...]) + b_in_ref[...]          # (T, H)
    h = _transformer_block(
        h, length, False, n_heads,
        ln1_g_ref[...], ln1_b_ref[...], wqkv_ref[...], bqkv_ref[...],
        wo_ref[...], bo_ref[...], ln2_g_ref[...], ln2_b_ref[...],
        w1_ref[...], b1_ref[...], w2_ref[...], b2_ref[...])

    # fused epilogue: length-masked mean pool (on the MXU) + output projection
    T = h.shape[0]
    frame_mask = (jax.lax.broadcasted_iota(jnp.int32, (1, T), 1)
                  < length).astype(jnp.float32)            # (1, T)
    pooled = _dot(frame_mask, h)                           # (1, H) via MXU
    cnt = jnp.maximum(jnp.sum(frame_mask, axis=-1, keepdims=True), 1.0)
    pooled = pooled * pl.reciprocal(cnt, approx=True)
    o_ref[0] = _dot(pooled, w_out_ref[...]) + b_out_ref[...]       # (1, E)


def _text_encoder_kernel(lens_ref, x_ref,
                         ln1_g_ref, ln1_b_ref, wqkv_ref, bqkv_ref,
                         wo_ref, bo_ref, ln2_g_ref, ln2_b_ref,
                         w1_ref, b1_ref, w2_ref, b2_ref,
                         lnf_g_ref, lnf_b_ref, wproj_ref, o_ref, *, n_heads):
    b = pl.program_id(0)
    length = lens_ref[b]

    x = x_ref[0]                                           # (S, H)
    x = _transformer_block(
        x, length, True, n_heads,
        ln1_g_ref[...], ln1_b_ref[...], wqkv_ref[...], bqkv_ref[...],
        wo_ref[...], bo_ref[...], ln2_g_ref[...], ln2_b_ref[...],
        w1_ref[...], b1_ref[...], w2_ref[...], b2_ref[...])

    # fused epilogue: final LN + EOS pooling (MXU one-hot matmul) + text_projection
    xf = _layernorm(x, lnf_g_ref[...], lnf_b_ref[...])
    S = xf.shape[0]
    # TODO(synk): real CLIP pools at argmax(input_ids) (EOS has the largest id);
    # with synthetic ids we pool at the last non-padding position instead.
    eos = length - 1
    onehot = (jax.lax.broadcasted_iota(jnp.int32, (1, S), 1)
              == eos).astype(jnp.float32)                  # (1, S)
    pooled = _dot(onehot, xf)                              # (1, H) via MXU
    o_ref[0] = _dot(pooled, wproj_ref[...])                # (1, E), no bias


# ----------------------------- wrappers -----------------------------

def _full2(_b, _lens):
    return (0, 0)


def _per_b3(b, _lens):
    return (b, 0, 0)


def motion_encoder_forward(p, motion, lengths, n_heads):
    B, T, Dm = motion.shape
    E = p['w_out'].shape[1]
    weights = [p['w_in'], p['b_in'],
               p['ln1_g'], p['ln1_b'], p['wqkv'], p['bqkv'],
               p['wo'], p['bo'], p['ln2_g'], p['ln2_b'],
               p['w1'], p['b1'], p['w2'], p['b2'],
               p['w_out'], p['b_out']]
    out = pl.pallas_call(
        functools.partial(_motion_encoder_kernel, n_heads=n_heads),
        out_shape=jax.ShapeDtypeStruct((B, 1, E), jnp.float32),
        grid_spec=pltpu.PrefetchScalarGridSpec(
            num_scalar_prefetch=1,
            grid=(B,),
            in_specs=[pl.BlockSpec((1, T, Dm), _per_b3)]
                     + [pl.BlockSpec(w.shape, _full2) for w in weights],
            out_specs=pl.BlockSpec((1, 1, E), _per_b3)),
        compiler_params=pltpu.CompilerParams(
            dimension_semantics=("parallel",)),
    )(lengths, motion, *weights)
    return out.reshape(B, E)


def text_encoder_forward(p, h, lengths, n_heads):
    B, S, H = h.shape
    E = p['wproj'].shape[1]
    weights = [p['ln1_g'], p['ln1_b'], p['wqkv'], p['bqkv'],
               p['wo'], p['bo'], p['ln2_g'], p['ln2_b'],
               p['w1'], p['b1'], p['w2'], p['b2'],
               p['lnf_g'], p['lnf_b'], p['wproj']]
    out = pl.pallas_call(
        functools.partial(_text_encoder_kernel, n_heads=n_heads),
        out_shape=jax.ShapeDtypeStruct((B, 1, E), jnp.float32),
        grid_spec=pltpu.PrefetchScalarGridSpec(
            num_scalar_prefetch=1,
            grid=(B,),
            in_specs=[pl.BlockSpec((1, S, H), _per_b3)]
                     + [pl.BlockSpec(w.shape, _full2) for w in weights],
            out_specs=pl.BlockSpec((1, 1, E), _per_b3)),
        compiler_params=pltpu.CompilerParams(
            dimension_semantics=("parallel",)),
    )(lengths, h, *weights)
    return out.reshape(B, E)


# ----------------------------- model (init + glue) -----------------------------

def _w_bf16(key, shape):
    return (0.02 * jax.random.normal(key, shape)).astype(jnp.bfloat16)


def _block_params(key, H, mlp_ratio=4):
    ks = jax.random.split(key, 4)
    return dict(
        ln1_g=jnp.ones((1, H), jnp.float32), ln1_b=jnp.zeros((1, H), jnp.float32),
        wqkv=_w_bf16(ks[0], (H, 3 * H)), bqkv=jnp.zeros((1, 3 * H), jnp.float32),
        wo=_w_bf16(ks[1], (H, H)), bo=jnp.zeros((1, H), jnp.float32),
        ln2_g=jnp.ones((1, H), jnp.float32), ln2_b=jnp.zeros((1, H), jnp.float32),
        w1=_w_bf16(ks[2], (H, mlp_ratio * H)),
        b1=jnp.zeros((1, mlp_ratio * H), jnp.float32),
        w2=_w_bf16(ks[3], (mlp_ratio * H, H)),
        b2=jnp.zeros((1, H), jnp.float32),
    )


class ClipMotionAlignModelPallas:
    """JAX/Pallas counterpart of ClipMotionAlignModel.forward."""

    def __init__(self, key, *, d_motion, hidden, n_heads, embed_dim,
                 vocab, max_seq, temperature=0.07):
        ks = jax.random.split(key, 7)
        self.n_heads = n_heads
        # motion encoder params (weights pre-cast bf16, biases pre-shaped (1,N))
        self.motion_params = dict(
            w_in=_w_bf16(ks[0], (d_motion, hidden)),
            b_in=jnp.zeros((1, hidden), jnp.float32),
            w_out=_w_bf16(ks[1], (hidden, embed_dim)),
            b_out=jnp.zeros((1, embed_dim), jnp.float32),
            **_block_params(ks[2], hidden))
        # CLIP text encoder params
        self.token_emb = (0.02 * jax.random.normal(ks[3], (vocab, hidden))
                          ).astype(jnp.float32)
        self.pos_emb = (0.02 * jax.random.normal(ks[4], (max_seq, hidden))
                        ).astype(jnp.float32)
        self.text_params = dict(
            lnf_g=jnp.ones((1, hidden), jnp.float32),
            lnf_b=jnp.zeros((1, hidden), jnp.float32),
            wproj=_w_bf16(ks[5], (hidden, embed_dim)),   # text_projection, no bias
            **_block_params(ks[6], hidden))
        # defined by the PyTorch module but unused in its forward
        self.logit_scale = jnp.log(jnp.asarray(1.0 / temperature, jnp.float32))

    def motion_encoder(self, motion, lengths):
        return motion_encoder_forward(self.motion_params, motion,
                                      lengths.astype(jnp.int32), self.n_heads)

    def get_text_features(self, input_ids, attention_mask):
        B, S = input_ids.shape
        # TODO(synk): vocab gather + positional add stay in plain JAX
        # (data-dependent gather into the embedding table).
        h = jnp.take(self.token_emb, input_ids, axis=0) + self.pos_emb[None, :S, :]
        lens = jnp.sum(attention_mask, axis=-1).astype(jnp.int32)
        return text_encoder_forward(self.text_params, h, lens, self.n_heads)

    def __call__(self, motion, lengths, input_ids, attention_mask):
        motion_emb = self.motion_encoder(motion, lengths)
        text_emb = self.get_text_features(input_ids, attention_mask)
        return motion_emb, text_emb


# ----------------------------- demo -----------------------------

if __name__ == "__main__":
    key = jax.random.PRNGKey(0)
    k_param, k_motion, k_ids = jax.random.split(key, 3)

    B, T, Dm = 2, 16, 16                 # motion: batch, frames, motion features
    S, H, nh, E, V = 8, 128, 2, 128, 64  # text seq, hidden (lane-dense), heads, embed, vocab

    model = ClipMotionAlignModelPallas(k_param, d_motion=Dm, hidden=H, n_heads=nh,
                                       embed_dim=E, vocab=V, max_seq=S)

    motion = jax.random.normal(k_motion, (B, T, Dm), jnp.float32)
    lengths = jnp.array([16, 11], jnp.int32)
    input_ids = jax.random.randint(k_ids, (B, S), 1, V)
    attention_mask = (jnp.arange(S)[None, :] < jnp.array([8, 5])[:, None]).astype(jnp.int32)

    motion_emb, text_emb = model(motion, lengths, input_ids, attention_mask)
    jax.block_until_ready((motion_emb, text_emb))

    assert motion_emb.shape == (B, E) and text_emb.shape == (B, E)
    assert bool(jnp.all(jnp.isfinite(motion_emb))) and bool(jnp.all(jnp.isfinite(text_emb)))
    print("KERNEL_OK")
</pallas_src>

<mosaic_0001>
module attributes {stable_mosaic.version = 11 : i64} {
  func.func @_motion_encoder_kernel(%arg0: i32, %arg1: memref<2xi32, #tpu.memory_space<smem>>, %arg2: memref<1x16x16xf32, #tpu.memory_space<vmem>>, %arg3: memref<16x128xbf16, #tpu.memory_space<vmem>>, %arg4: memref<1x128xf32, #tpu.memory_space<vmem>>, %arg5: memref<1x128xf32, #tpu.memory_space<vmem>>, %arg6: memref<1x128xf32, #tpu.memory_space<vmem>>, %arg7: memref<128x384xbf16, #tpu.memory_space<vmem>>, %arg8: memref<1x384xf32, #tpu.memory_space<vmem>>, %arg9: memref<128x128xbf16, #tpu.memory_space<vmem>>, %arg10: memref<1x128xf32, #tpu.memory_space<vmem>>, %arg11: memref<1x128xf32, #tpu.memory_space<vmem>>, %arg12: memref<1x128xf32, #tpu.memory_space<vmem>>, %arg13: memref<128x512xbf16, #tpu.memory_space<vmem>>, %arg14: memref<1x512xf32, #tpu.memory_space<vmem>>, %arg15: memref<512x128xbf16, #tpu.memory_space<vmem>>, %arg16: memref<1x128xf32, #tpu.memory_space<vmem>>, %arg17: memref<128x128xbf16, #tpu.memory_space<vmem>>, %arg18: memref<1x128xf32, #tpu.memory_space<vmem>>, %arg19: memref<1x1x128xf32, #tpu.memory_space<vmem>>) attributes {dimension_semantics = [#tpu.dimension_semantics<parallel>], iteration_bounds = array<i64: 2>, scalar_prefetch = 1 : i64, scratch_operands = 0 : i64, tpu.core_type = #tpu.core_type<tc>, window_params = [{transform_indices = @transform_0, window_bounds = array<i64: 1, 16, 16>}, {pipeline_mode = #tpu.pipeline_mode<synchronous>, transform_indices = @transform_1, window_bounds = array<i64: 16, 128>}, {pipeline_mode = #tpu.pipeline_mode<synchronous>, transform_indices = @transform_2, window_bounds = array<i64: 1, 128>}, {pipeline_mode = #tpu.pipeline_mode<synchronous>, transform_indices = @transform_3, window_bounds = array<i64: 1, 128>}, {pipeline_mode = #tpu.pipeline_mode<synchronous>, transform_indices = @transform_4, window_bounds = array<i64: 1, 128>}, {pipeline_mode = #tpu.pipeline_mode<synchronous>, transform_indices = @transform_5, window_bounds = array<i64: 128, 384>}, {pipeline_mode = #tpu.pipeline_mode<synchronous>, transform_indices = @transform_6, window_bounds = array<i64: 1, 384>}, {pipeline_mode = #tpu.pipeline_mode<synchronous>, transform_indices = @transform_7, window_bounds = array<i64: 128, 128>}, {pipeline_mode = #tpu.pipeline_mode<synchronous>, transform_indices = @transform_8, window_bounds = array<i64: 1, 128>}, {pipeline_mode = #tpu.pipeline_mode<synchronous>, transform_indices = @transform_9, window_bounds = array<i64: 1, 128>}, {pipeline_mode = #tpu.pipeline_mode<synchronous>, transform_indices = @transform_10, window_bounds = array<i64: 1, 128>}, {pipeline_mode = #tpu.pipeline_mode<synchronous>, transform_indices = @transform_11, window_bounds = array<i64: 128, 512>}, {pipeline_mode = #tpu.pipeline_mode<synchronous>, transform_indices = @transform_12, window_bounds = array<i64: 1, 512>}, {pipeline_mode = #tpu.pipeline_mode<synchronous>, transform_indices = @transform_13, window_bounds = array<i64: 512, 128>}, {pipeline_mode = #tpu.pipeline_mode<synchronous>, transform_indices = @transform_14, window_bounds = array<i64: 1, 128>}, {pipeline_mode = #tpu.pipeline_mode<synchronous>, transform_indices = @transform_15, window_bounds = array<i64: 128, 128>}, {pipeline_mode = #tpu.pipeline_mode<synchronous>, transform_indices = @transform_16, window_bounds = array<i64: 1, 128>}, {transform_indices = @transform_17, window_bounds = array<i64: 1, 1, 128>}]} {
    %0 = arith.index_cast %arg0 : i32 to index
    %1 = memref.load %arg1[%0] : memref<2xi32, #tpu.memory_space<smem>>
    %c0 = arith.constant 0 : index
    %c0_0 = arith.constant 0 : index
    %c0_1 = arith.constant 0 : index
    %2 = vector.load %arg2[%c0, %c0_0, %c0_1] : memref<1x16x16xf32, #tpu.memory_space<vmem>>, vector<1x16x16xf32>
    %3 = vector.shape_cast %2 : vector<1x16x16xf32> to vector<16x16xf32>
    %c0_2 = arith.constant 0 : index
    %c0_3 = arith.constant 0 : index
    %4 = vector.load %arg3[%c0_2, %c0_3] : memref<16x128xbf16, #tpu.memory_space<vmem>>, vector<16x128xbf16>
    %5 = arith.truncf %3 : vector<16x16xf32> to vector<16x16xbf16>
    %cst = arith.constant dense<0.000000e+00> : vector<16x128xf32>
    %6 = tpu.matmul %5, %4, %cst {dimension_numbers = #tpu.dot_dimension_numbers<[1], [0], [0], [1], [0, 0, 1, 1], [], []>} : vector<16x16xbf16>, vector<16x128xbf16>, vector<16x128xf32> -> vector<16x128xf32>
    %c0_4 = arith.constant 0 : index
    %c0_5 = arith.constant 0 : index
    %7 = vector.load %arg4[%c0_4, %c0_5] : memref<1x128xf32, #tpu.memory_space<vmem>>, vector<1x128xf32>
    %8 = vector.broadcast %7 : vector<1x128xf32> to vector<16x128xf32>
    %9 = arith.addf %6, %8 : vector<16x128xf32>
    %c0_6 = arith.constant 0 : index
    %c0_7 = arith.constant 0 : index
    %10 = vector.load %arg5[%c0_6, %c0_7] : memref<1x128xf32, #tpu.memory_space<vmem>>, vector<1x128xf32>
    %c0_8 = arith.constant 0 : index
    %c0_9 = arith.constant 0 : index
    %11 = vector.load %arg6[%c0_8, %c0_9] : memref<1x128xf32, #tpu.memory_space<vmem>>, vector<1x128xf32>
    %c0_10 = arith.constant 0 : index
    %c0_11 = arith.constant 0 : index
    %12 = vector.load %arg7[%c0_10, %c0_11] : memref<128x384xbf16, #tpu.memory_space<vmem>>, vector<128x384xbf16>
    %c0_12 = arith.constant 0 : index
    %c0_13 = arith.constant 0 : index
    %13 = vector.load %arg8[%c0_12, %c0_13] : memref<1x384xf32, #tpu.memory_space<vmem>>, vector<1x384xf32>
    %c0_14 = arith.constant 0 : index
    %c0_15 = arith.constant 0 : index
    %14 = vector.load %arg9[%c0_14, %c0_15] : memref<128x128xbf16, #tpu.memory_space<vmem>>, vector<128x128xbf16>
    %c0_16 = arith.constant 0 : index
    %c0_17 = arith.constant 0 : index
    %15 = vector.load %arg10[%c0_16, %c0_17] : memref<1x128xf32, #tpu.memory_space<vmem>>, vector<1x128xf32>
    %c0_18 = arith.constant 0 : index
    %c0_19 = arith.constant 0 : index
    %16 = vector.load %arg11[%c0_18, %c0_19] : memref<1x128xf32, #tpu.memory_space<vmem>>, vector<1x128xf32>
    %c0_20 = arith.constant 0 : index
    %c0_21 = arith.constant 0 : index
    %17 = vector.load %arg12[%c0_20, %c0_21] : memref<1x128xf32, #tpu.memory_space<vmem>>, vector<1x128xf32>
    %c0_22 = arith.constant 0 : index
    %c0_23 = arith.constant 0 : index
    %18 = vector.load %arg13[%c0_22, %c0_23] : memref<128x512xbf16, #tpu.memory_space<vmem>>, vector<128x512xbf16>
    %c0_24 = arith.constant 0 : index
    %c0_25 = arith.constant 0 : index
    %19 = vector.load %arg14[%c0_24, %c0_25] : memref<1x512xf32, #tpu.memory_space<vmem>>, vector<1x512xf32>
    %c0_26 = arith.constant 0 : index
    %c0_27 = arith.constant 0 : index
    %20 = vector.load %arg15[%c0_26, %c0_27] : memref<512x128xbf16, #tpu.memory_space<vmem>>, vector<512x128xbf16>
    %c0_28 = arith.constant 0 : index
    %c0_29 = arith.constant 0 : index
    %21 = vector.load %arg16[%c0_28, %c0_29] : memref<1x128xf32, #tpu.memory_space<vmem>>, vector<1x128xf32>
    %cst_30 = arith.constant dense<0.000000e+00> : vector<16xf32>
    %22 = vector.multi_reduction <add>, %9, %cst_30 [1] : vector<16x128xf32> to vector<16xf32>
    %23 = vector.shape_cast %22 : vector<16xf32> to vector<16x1xf32>
    %cst_31 = arith.constant 1.280000e+02 : f32
    %24 = vector.broadcast %cst_31 : f32 to vector<16x1xf32>
    %25 = arith.divf %23, %24 : vector<16x1xf32>
    %26 = vector.broadcast %25 : vector<16x1xf32> to vector<16x128xf32>
    %27 = arith.subf %9, %26 : vector<16x128xf32>
    %28 = arith.mulf %27, %27 : vector<16x128xf32>
    %cst_32 = arith.constant dense<0.000000e+00> : vector<16xf32>
    %29 = vector.multi_reduction <add>, %28, %cst_32 [1] : vector<16x128xf32> to vector<16xf32>
    %30 = vector.shape_cast %29 : vector<16xf32> to vector<16x1xf32>
    %cst_33 = arith.constant 1.280000e+02 : f32
    %31 = vector.broadcast %cst_33 : f32 to vector<16x1xf32>
    %32 = arith.divf %30, %31 : vector<16x1xf32>
    %cst_34 = arith.constant 9.99999974E-6 : f32
    %33 = vector.broadcast %cst_34 : f32 to vector<16x1xf32>
    %34 = arith.addf %32, %33 : vector<16x1xf32>
    %35 = math.rsqrt %34 : vector<16x1xf32>
    %36 = vector.broadcast %35 : vector<16x1xf32> to vector<16x128xf32>
    %37 = arith.mulf %27, %36 : vector<16x128xf32>
    %38 = vector.broadcast %10 : vector<1x128xf32> to vector<16x128xf32>
    %39 = arith.mulf %37, %38 : vector<16x128xf32>
    %40 = vector.broadcast %11 : vector<1x128xf32> to vector<16x128xf32>
    %41 = arith.addf %39, %40 : vector<16x128xf32>
    %42 = arith.truncf %41 : vector<16x128xf32> to vector<16x128xbf16>
    %cst_35 = arith.constant dense<0.000000e+00> : vector<16x384xf32>
    %43 = tpu.matmul %42, %12, %cst_35 {dimension_numbers = #tpu.dot_dimension_numbers<[1], [0], [0], [1], [0, 0, 1, 1], [], []>} : vector<16x128xbf16>, vector<128x384xbf16>, vector<16x384xf32> -> vector<16x384xf32>
    %44 = vector.broadcast %13 : vector<1x384xf32> to vector<16x384xf32>
    %45 = arith.addf %43, %44 : vector<16x384xf32>
    %46 = vector.extract_strided_slice %45 {offsets = [0, 0], sizes = [16, 128], strides = [1, 1]} : vector<16x384xf32> to vector<16x128xf32>
    %cst_36 = arith.constant 1.250000e-01 : f32
    %47 = vector.broadcast %cst_36 : f32 to vector<16x128xf32>
    %48 = arith.mulf %46, %47 : vector<16x128xf32>
    %49 = vector.extract_strided_slice %45 {offsets = [0, 128], sizes = [16, 128], strides = [1, 1]} : vector<16x384xf32> to vector<16x128xf32>
    %50 = vector.extract_strided_slice %45 {offsets = [0, 256], sizes = [16, 128], strides = [1, 1]} : vector<16x384xf32> to vector<16x128xf32>
    %51 = tpu.iota {dimensions = array<i32: 1>} : vector<16x16xi32>
    %52 = vector.broadcast %1 : i32 to vector<16x16xi32>
    %53 = arith.cmpi slt, %51, %52 : vector<16x16xi32>
    %cst_37 = arith.constant 0.000000e+00 : f32
    %54 = vector.broadcast %cst_37 : f32 to vector<16x128xf32>
    %55 = vector.extract_strided_slice %48 {offsets = [0, 0], sizes = [16, 64], strides = [1, 1]} : vector<16x128xf32> to vector<16x64xf32>
    %56 = vector.extract_strided_slice %49 {offsets = [0, 0], sizes = [16, 64], strides = [1, 1]} : vector<16x128xf32> to vector<16x64xf32>
    %57 = vector.extract_strided_slice %50 {offsets = [0, 0], sizes = [16, 64], strides = [1, 1]} : vector<16x128xf32> to vector<16x64xf32>
    %58 = arith.truncf %55 : vector<16x64xf32> to vector<16x64xbf16>
    %59 = arith.truncf %56 : vector<16x64xf32> to vector<16x64xbf16>
    %cst_38 = arith.constant dense<0.000000e+00> : vector<16x16xf32>
    %60 = tpu.matmul %58, %59, %cst_38 {dimension_numbers = #tpu.dot_dimension_numbers<[1], [1], [0], [0], [0, 0, 1, 0], [], []>} : vector<16x64xbf16>, vector<16x64xbf16>, vector<16x16xf32> -> vector<16x16xf32>
    %cst_39 = arith.constant -1.000000e+30 : f32
    %61 = vector.broadcast %cst_39 : f32 to vector<16x16xf32>
    %62 = arith.select %53, %60, %61 : vector<16x16xi1>, vector<16x16xf32>
    %cst_40 = arith.constant dense<0xFF800000> : vector<16xf32>
    %63 = vector.multi_reduction <maximumf>, %62, %cst_40 [1] : vector<16x16xf32> to vector<16xf32>
    %64 = vector.shape_cast %63 : vector<16xf32> to vector<16x1xf32>
    %65 = vector.broadcast %64 : vector<16x1xf32> to vector<16x16xf32>
    %66 = arith.subf %62, %65 : vector<16x16xf32>
    %67 = math.exp %66 : vector<16x16xf32>
    %cst_41 = arith.constant dense<0.000000e+00> : vector<16xf32>
    %68 = vector.multi_reduction <add>, %67, %cst_41 [1] : vector<16x16xf32> to vector<16xf32>
    %69 = vector.shape_cast %68 : vector<16xf32> to vector<16x1xf32>
    %70 = arith.truncf %67 : vector<16x16xf32> to vector<16x16xbf16>
    %71 = arith.truncf %57 : vector<16x64xf32> to vector<16x64xbf16>
    %cst_42 = arith.constant dense<0.000000e+00> : vector<16x64xf32>
    %72 = tpu.matmul %70, %71, %cst_42 {dimension_numbers = #tpu.dot_dimension_numbers<[1], [0], [0], [1], [0, 0, 1, 1], [], []>} : vector<16x16xbf16>, vector<16x64xbf16>, vector<16x64xf32> -> vector<16x64xf32>
    %73 = tpu.reciprocal %69 {approx = true} : vector<16x1xf32> -> vector<16x1xf32>
    %74 = vector.broadcast %73 : vector<16x1xf32> to vector<16x64xf32>
    %75 = arith.mulf %72, %74 : vector<16x64xf32>
    %76 = vector.extract_strided_slice %14 {offsets = [0, 0], sizes = [64, 128], strides = [1, 1]} : vector<128x128xbf16> to vector<64x128xbf16>
    %77 = arith.truncf %75 : vector<16x64xf32> to vector<16x64xbf16>
    %cst_43 = arith.constant dense<0.000000e+00> : vector<16x128xf32>
    %78 = tpu.matmul %77, %76, %cst_43 {dimension_numbers = #tpu.dot_dimension_numbers<[1], [0], [0], [1], [0, 0, 1, 1], [], []>} : vector<16x64xbf16>, vector<64x128xbf16>, vector<16x128xf32> -> vector<16x128xf32>
    %79 = arith.addf %54, %78 : vector<16x128xf32>
    %80 = vector.extract_strided_slice %48 {offsets = [0, 64], sizes = [16, 64], strides = [1, 1]} : vector<16x128xf32> to vector<16x64xf32>
    %81 = vector.extract_strided_slice %49 {offsets = [0, 64], sizes = [16, 64], strides = [1, 1]} : vector<16x128xf32> to vector<16x64xf32>
    %82 = vector.extract_strided_slice %50 {offsets = [0, 64], sizes = [16, 64], strides = [1, 1]} : vector<16x128xf32> to vector<16x64xf32>
    %83 = arith.truncf %80 : vector<16x64xf32> to vector<16x64xbf16>
    %84 = arith.truncf %81 : vector<16x64xf32> to vector<16x64xbf16>
    %cst_44 = arith.constant dense<0.000000e+00> : vector<16x16xf32>
    %85 = tpu.matmul %83, %84, %cst_44 {dimension_numbers = #tpu.dot_dimension_numbers<[1], [1], [0], [0], [0, 0, 1, 0], [], []>} : vector<16x64xbf16>, vector<16x64xbf16>, vector<16x16xf32> -> vector<16x16xf32>
    %cst_45 = arith.constant -1.000000e+30 : f32
    %86 = vector.broadcast %cst_45 : f32 to vector<16x16xf32>
    %87 = arith.select %53, %85, %86 : vector<16x16xi1>, vector<16x16xf32>
    %cst_46 = arith.constant dense<0xFF800000> : vector<16xf32>
    %88 = vector.multi_reduction <maximumf>, %87, %cst_46 [1] : vector<16x16xf32> to vector<16xf32>
    %89 = vector.shape_cast %88 : vector<16xf32> to vector<16x1xf32>
    %90 = vector.broadcast %89 : vector<16x1xf32> to vector<16x16xf32>
    %91 = arith.subf %87, %90 : vector<16x16xf32>
    %92 = math.exp %91 : vector<16x16xf32>
    %cst_47 = arith.constant dense<0.000000e+00> : vector<16xf32>
    %93 = vector.multi_reduction <add>, %92, %cst_47 [1] : vector<16x16xf32> to vector<16xf32>
    %94 = vector.shape_cast %93 : vector<16xf32> to vector<16x1xf32>
    %95 = arith.truncf %92 : vector<16x16xf32> to vector<16x16xbf16>
    %96 = arith.truncf %82 : vector<16x64xf32> to vector<16x64xbf16>
    %cst_48 = arith.constant dense<0.000000e+00> : vector<16x64xf32>
    %97 = tpu.matmul %95, %96, %cst_48 {dimension_numbers = #tpu.dot_dimension_numbers<[1], [0], [0], [1], [0, 0, 1, 1], [], []>} : vector<16x16xbf16>, vector<16x64xbf16>, vector<16x64xf32> -> vector<16x64xf32>
    %98 = tpu.reciprocal %94 {approx = true} : vector<16x1xf32> -> vector<16x1xf32>
    %99 = vector.broadcast %98 : vector<16x1xf32> to vector<16x64xf32>
    %100 = arith.mulf %97, %99 : vector<16x64xf32>
    %101 = vector.extract_strided_slice %14 {offsets = [64, 0], sizes = [64, 128], strides = [1, 1]} : vector<128x128xbf16> to vector<64x128xbf16>
    %102 = arith.truncf %100 : vector<16x64xf32> to vector<16x64xbf16>
    %cst_49 = arith.constant dense<0.000000e+00> : vector<16x128xf32>
    %103 = tpu.matmul %102, %101, %cst_49 {dimension_numbers = #tpu.dot_dimension_numbers<[1], [0], [0], [1], [0, 0, 1, 1], [], []>} : vector<16x64xbf16>, vector<64x128xbf16>, vector<16x128xf32> -> vector<16x128xf32>
    %104 = arith.addf %79, %103 : vector<16x128xf32>
    %105 = arith.addf %9, %104 : vector<16x128xf32>
    %106 = vector.broadcast %15 : vector<1x128xf32> to vector<16x128xf32>
    %107 = arith.addf %105, %106 : vector<16x128xf32>
    %cst_50 = arith.constant dense<0.000000e+00> : vector<16xf32>
    %108 = vector.multi_reduction <add>, %107, %cst_50 [1] : vector<16x128xf32> to vector<16xf32>
    %109 = vector.shape_cast %108 : vector<16xf32> to vector<16x1xf32>
    %cst_51 = arith.constant 1.280000e+02 : f32
    %110 = vector.broadcast %cst_51 : f32 to vector<16x1xf32>
    %111 = arith.divf %109, %110 : vector<16x1xf32>
    %112 = vector.broadcast %111 : vector<16x1xf32> to vector<16x128xf32>
    %113 = arith.subf %107, %112 : vector<16x128xf32>
    %114 = arith.mulf %113, %113 : vector<16x128xf32>
    %cst_52 = arith.constant dense<0.000000e+00> : vector<16xf32>
    %115 = vector.multi_reduction <add>, %114, %cst_52 [1] : vector<16x128xf32> to vector<16xf32>
    %116 = vector.shape_cast %115 : vector<16xf32> to vector<16x1xf32>
    %cst_53 = arith.constant 1.280000e+02 : f32
    %117 = vector.broadcast %cst_53 : f32 to vector<16x1xf32>
    %118 = arith.divf %116, %117 : vector<16x1xf32>
    %cst_54 = arith.constant 9.99999974E-6 : f32
    %119 = vector.broadcast %cst_54 : f32 to vector<16x1xf32>
    %120 = arith.addf %118, %119 : vector<16x1xf32>
    %121 = math.rsqrt %120 : vector<16x1xf32>
    %122 = vector.broadcast %121 : vector<16x1xf32> to vector<16x128xf32>
    %123 = arith.mulf %113, %122 : vector<16x128xf32>
    %124 = vector.broadcast %16 : vector<1x128xf32> to vector<16x128xf32>
    %125 = arith.mulf %123, %124 : vector<16x128xf32>
    %126 = vector.broadcast %17 : vector<1x128xf32> to vector<16x128xf32>
    %127 = arith.addf %125, %126 : vector<16x128xf32>
    %128 = arith.truncf %127 : vector<16x128xf32> to vector<16x128xbf16>
    %cst_55 = arith.constant dense<0.000000e+00> : vector<16x512xf32>
    %129 = tpu.matmul %128, %18, %cst_55 {dimension_numbers = #tpu.dot_dimension_numbers<[1], [0], [0], [1], [0, 0, 1, 1], [], []>} : vector<16x128xbf16>, vector<128x512xbf16>, vector<16x512xf32> -> vector<16x512xf32>
    %130 = vector.broadcast %19 : vector<1x512xf32> to vector<16x512xf32>
    %131 = arith.addf %129, %130 : vector<16x512xf32>
    %cst_56 = arith.constant 5.000000e-01 : f32
    %132 = vector.broadcast %cst_56 : f32 to vector<16x512xf32>
    %133 = arith.mulf %132, %131 : vector<16x512xf32>
    %cst_57 = arith.constant 4.471500e-02 : f32
    %134 = vector.broadcast %cst_57 : f32 to vector<16x512xf32>
    %135 = arith.mulf %134, %131 : vector<16x512xf32>
    %136 = arith.mulf %135, %131 : vector<16x512xf32>
    %137 = arith.mulf %136, %131 : vector<16x512xf32>
    %138 = arith.addf %131, %137 : vector<16x512xf32>
    %cst_58 = arith.constant 0.797884583 : f32
    %139 = vector.broadcast %cst_58 : f32 to vector<16x512xf32>
    %140 = arith.mulf %139, %138 : vector<16x512xf32>
    %141 = math.tanh %140 : vector<16x512xf32>
    %cst_59 = arith.constant 1.000000e+00 : f32
    %142 = vector.broadcast %cst_59 : f32 to vector<16x512xf32>
    %143 = arith.addf %142, %141 : vector<16x512xf32>
    %144 = arith.mulf %133, %143 : vector<16x512xf32>
    %145 = arith.truncf %144 : vector<16x512xf32> to vector<16x512xbf16>
    %cst_60 = arith.constant dense<0.000000e+00> : vector<16x128xf32>
    %146 = tpu.matmul %145, %20, %cst_60 {dimension_numbers = #tpu.dot_dimension_numbers<[1], [0], [0], [1], [0, 0, 1, 1], [], []>} : vector<16x512xbf16>, vector<512x128xbf16>, vector<16x128xf32> -> vector<16x128xf32>
    %147 = arith.addf %107, %146 : vector<16x128xf32>
    %148 = vector.broadcast %21 : vector<1x128xf32> to vector<16x128xf32>
    %149 = arith.addf %147, %148 : vector<16x128xf32>
    %150 = tpu.iota {dimensions = array<i32: 1>} : vector<1x16xi32>
    %151 = vector.broadcast %1 : i32 to vector<1x16xi32>
    %152 = arith.cmpi slt, %150, %151 : vector<1x16xi32>
    %153 = arith.extui %152 : vector<1x16xi1> to vector<1x16xi32>
    %154 = arith.sitofp %153 : vector<1x16xi32> to vector<1x16xf32>
    %155 = arith.truncf %154 : vector<1x16xf32> to vector<1x16xbf16>
    %156 = arith.truncf %149 : vector<16x128xf32> to vector<16x128xbf16>
    %cst_61 = arith.constant dense<0.000000e+00> : vector<1x128xf32>
    %157 = tpu.matmul %155, %156, %cst_61 {dimension_numbers = #tpu.dot_dimension_numbers<[1], [0], [0], [1], [0, 0, 1, 1], [], []>} : vector<1x16xbf16>, vector<16x128xbf16>, vector<1x128xf32> -> vector<1x128xf32>
    %cst_62 = arith.constant dense<0.000000e+00> : vector<1xf32>
    %158 = vector.multi_reduction <add>, %154, %cst_62 [1] : vector<1x16xf32> to vector<1xf32>
    %159 = vector.shape_cast %158 : vector<1xf32> to vector<1x1xf32>
    %cst_63 = arith.constant 1.000000e+00 : f32
    %160 = vector.broadcast %cst_63 : f32 to vector<1x1xf32>
    %161 = arith.maximumf %159, %160 : vector<1x1xf32>
    %162 = tpu.reciprocal %161 {approx = true} : vector<1x1xf32> -> vector<1x1xf32>
    %163 = vector.broadcast %162 : vector<1x1xf32> to vector<1x128xf32>
    %164 = arith.mulf %157, %163 : vector<1x128xf32>
    %c0_64 = arith.constant 0 : index
    %c0_65 = arith.constant 0 : index
    %165 = vector.load %arg17[%c0_64, %c0_65] : memref<128x128xbf16, #tpu.memory_space<vmem>>, vector<128x128xbf16>
    %166 = arith.truncf %164 : vector<1x128xf32> to vector<1x128xbf16>
    %cst_66 = arith.constant dense<0.000000e+00> : vector<1x128xf32>
    %167 = tpu.matmul %166, %165, %cst_66 {dimension_numbers = #tpu.dot_dimension_numbers<[1], [0], [0], [1], [0, 0, 1, 1], [], []>} : vector<1x128xbf16>, vector<128x128xbf16>, vector<1x128xf32> -> vector<1x128xf32>
    %c0_67 = arith.constant 0 : index
    %c0_68 = arith.constant 0 : index
    %168 = vector.load %arg18[%c0_67, %c0_68] : memref<1x128xf32, #tpu.memory_space<vmem>>, vector<1x128xf32>
    %169 = arith.addf %167, %168 : vector<1x128xf32>
    %c0_69 = arith.constant 0 : index
    %c0_70 = arith.constant 0 : index
    %c0_71 = arith.constant 0 : index
    %170 = vector.load %arg19[%c0_69, %c0_70, %c0_71] : memref<1x1x128xf32, #tpu.memory_space<vmem>>, vector<1x1x128xf32>
    %171 = vector.shape_cast %170 : vector<1x1x128xf32> to vector<1x128xf32>
    %172 = vector.shape_cast %169 : vector<1x128xf32> to vector<1x1x128xf32>
    tpu.vector_store %arg19[%c0_69, %c0_70, %c0_71], %172 {strides = array<i32>} : memref<1x1x128xf32, #tpu.memory_space<vmem>>, vector<1x1x128xf32>,
    return
  }
  func.func @transform_0(%arg0: i32, %arg1: memref<2xi32, #tpu.memory_space<smem>>) -> (i32, i32, i32) {
    %c0_i32 = arith.constant 0 : i32
    %c0_i32_0 = arith.constant 0 : i32
    %c0_i32_1 = arith.constant 0 : i32
    return %arg0, %c0_i32, %c0_i32_0 : i32, i32, i32
  }
  func.func @transform_1(%arg0: i32, %arg1: memref<2xi32, #tpu.memory_space<smem>>) -> (i32, i32) {
    %c0_i32 = arith.constant 0 : i32
    %c0_i32_0 = arith.constant 0 : i32
    %c0_i32_1 = arith.constant 0 : i32
    return %c0_i32, %c0_i32_0 : i32, i32
  }
  func.func @transform_2(%arg0: i32, %arg1: memref<2xi32, #tpu.memory_space<smem>>) -> (i32, i32) {
    %c0_i32 = arith.constant 0 : i32
    %c0_i32_0 = arith.constant 0 : i32
    %c0_i32_1 = arith.constant 0 : i32
    return %c0_i32, %c0_i32_0 : i32, i32
  }
  func.func @transform_3(%arg0: i32, %arg1: memref<2xi32, #tpu.memory_space<smem>>) -> (i32, i32) {
    %c0_i32 = arith.constant 0 : i32
    %c0_i32_0 = arith.constant 0 : i32
    %c0_i32_1 = arith.constant 0 : i32
    return %c0_i32, %c0_i32_0 : i32, i32
  }
  func.func @transform_4(%arg0: i32, %arg1: memref<2xi32, #tpu.memory_space<smem>>) -> (i32, i32) {
    %c0_i32 = arith.constant 0 : i32
    %c0_i32_0 = arith.constant 0 : i32
    %c0_i32_1 = arith.constant 0 : i32
    return %c0_i32, %c0_i32_0 : i32, i32
  }
  func.func @transform_5(%arg0: i32, %arg1: memref<2xi32, #tpu.memory_space<smem>>) -> (i32, i32) {
    %c0_i32 = arith.constant 0 : i32
    %c0_i32_0 = arith.constant 0 : i32
    %c0_i32_1 = arith.constant 0 : i32
    return %c0_i32, %c0_i32_0 : i32, i32
  }
  func.func @transform_6(%arg0: i32, %arg1: memref<2xi32, #tpu.memory_space<smem>>) -> (i32, i32) {
    %c0_i32 = arith.constant 0 : i32
    %c0_i32_0 = arith.constant 0 : i32
    %c0_i32_1 = arith.constant 0 : i32
    return %c0_i32, %c0_i32_0 : i32, i32
  }
  func.func @transform_7(%arg0: i32, %arg1: memref<2xi32, #tpu.memory_space<smem>>) -> (i32, i32) {
    %c0_i32 = arith.constant 0 : i32
    %c0_i32_0 = arith.constant 0 : i32
    %c0_i32_1 = arith.constant 0 : i32
    return %c0_i32, %c0_i32_0 : i32, i32
  }
  func.func @transform_8(%arg0: i32, %arg1: memref<2xi32, #tpu.memory_space<smem>>) -> (i32, i32) {
    %c0_i32 = arith.constant 0 : i32
    %c0_i32_0 = arith.constant 0 : i32
    %c0_i32_1 = arith.constant 0 : i32
    return %c0_i32, %c0_i32_0 : i32, i32
  }
  func.func @transform_9(%arg0: i32, %arg1: memref<2xi32, #tpu.memory_space<smem>>) -> (i32, i32) {
    %c0_i32 = arith.constant 0 : i32
    %c0_i32_0 = arith.constant 0 : i32
    %c0_i32_1 = arith.constant 0 : i32
    return %c0_i32, %c0_i32_0 : i32, i32
  }
  func.func @transform_10(%arg0: i32, %arg1: memref<2xi32, #tpu.memory_space<smem>>) -> (i32, i32) {
    %c0_i32 = arith.constant 0 : i32
    %c0_i32_0 = arith.constant 0 : i32
    %c0_i32_1 = arith.constant 0 : i32
    return %c0_i32, %c0_i32_0 : i32, i32
  }
  func.func @transform_11(%arg0: i32, %arg1: memref<2xi32, #tpu.memory_space<smem>>) -> (i32, i32) {
    %c0_i32 = arith.constant 0 : i32
    %c0_i32_0 = arith.constant 0 : i32
    %c0_i32_1 = arith.constant 0 : i32
    return %c0_i32, %c0_i32_0 : i32, i32
  }
  func.func @transform_12(%arg0: i32, %arg1: memref<2xi32, #tpu.memory_space<smem>>) -> (i32, i32) {
    %c0_i32 = arith.constant 0 : i32
    %c0_i32_0 = arith.constant 0 : i32
    %c0_i32_1 = arith.constant 0 : i32
    return %c0_i32, %c0_i32_0 : i32, i32
  }
  func.func @transform_13(%arg0: i32, %arg1: memref<2xi32, #tpu.memory_space<smem>>) -> (i32, i32) {
    %c0_i32 = arith.constant 0 : i32
    %c0_i32_0 = arith.constant 0 : i32
    %c0_i32_1 = arith.constant 0 : i32
    return %c0_i32, %c0_i32_0 : i32, i32
  }
  func.func @transform_14(%arg0: i32, %arg1: memref<2xi32, #tpu.memory_space<smem>>) -> (i32, i32) {
    %c0_i32 = arith.constant 0 : i32
    %c0_i32_0 = arith.constant 0 : i32
    %c0_i32_1 = arith.constant 0 : i32
    return %c0_i32, %c0_i32_0 : i32, i32
  }
  func.func @transform_15(%arg0: i32, %arg1: memref<2xi32, #tpu.memory_space<smem>>) -> (i32, i32) {
    %c0_i32 = arith.constant 0 : i32
    %c0_i32_0 = arith.constant 0 : i32
    %c0_i32_1 = arith.constant 0 : i32
    return %c0_i32, %c0_i32_0 : i32, i32
  }
  func.func @transform_16(%arg0: i32, %arg1: memref<2xi32, #tpu.memory_space<smem>>) -> (i32, i32) {
    %c0_i32 = arith.constant 0 : i32
    %c0_i32_0 = arith.constant 0 : i32
    %c0_i32_1 = arith.constant 0 : i32
    return %c0_i32, %c0_i32_0 : i32, i32
  }
  func.func @transform_17(%arg0: i32, %arg1: memref<2xi32, #tpu.memory_space<smem>>) -> (i32, i32, i32) {
    %c0_i32 = arith.constant 0 : i32
    %c0_i32_0 = arith.constant 0 : i32
    %c0_i32_1 = arith.constant 0 : i32
    return %arg0, %c0_i32, %c0_i32_0 : i32, i32, i32
  }
}

</mosaic_0001>

<bundles_post_ra>
// kernel: tpu_custom_call.1
= control target key start
LH: loop header
LB: loop body
LE: loop exit
PB: predicated region body
PF: predicated region fallthrough
CT: control target
= control target key end

     0   :  { %s3420_s30 = smov [#allocation3]   ;;  %s3895_s0 = inlined_call_operand.hbm [shape: s32[2], index: 0, kind: input, shape index: {}]   ;;  %s3896_s1 = inlined_call_operand.hbm [shape: f32[2,16,16], index: 1, kind: input, shape index: {}]   ;;  %s3897_s2 = inlined_call_operand.hbm [shape: bf16[16,128], index: 2, kind: input, shape index: {}]   ;;  %s3898_s3 = inlined_call_operand.hbm [shape: f32[1,128], index: 3, kind: input, shape index: {}]   ;;  %s3899_s4 = inlined_call_operand.hbm [shape: f32[1,128], index: 4, kind: input, shape index: {}]   ;;  %s3900_s5 = inlined_call_operand.hbm [shape: f32[1,128], index: 5, kind: input, shape index: {}]   ;;  %s3901_s6 = inlined_call_operand.hbm [shape: bf16[128,384], index: 6, kind: input, shape index: {}]   ;;  %s3902_s7 = inlined_call_operand.vmem [shape: f32[1,384], index: 7, kind: input, shape index: {}]   ;;  %s3903_s8 = inlined_call_operand.hbm [shape: bf16[128,128], index: 8, kind: input, shape index: {}]   ;;  %s3904_s9 = inlined_call_operand.vmem [shape: f32[1,128], index: 9, kind: input, shape index: {}]   ;;  %s3905_s10 = inlined_call_operand.vmem [shape: f32[1,128], index: 10, kind: input, shape index: {}]   ;;  %s3906_s11 = inlined_call_operand.vmem [shape: f32[1,128], index: 11, kind: input, shape index: {}]   ;;  %s3907_s12 = inlined_call_operand.hbm [shape: bf16[128,512], index: 12, kind: input, shape index: {}]   ;;  %s3908_s13 = inlined_call_operand.vmem [shape: f32[1,512], index: 13, kind: input, shape index: {}]   ;;  %s3909_s14 = inlined_call_operand.hbm [shape: bf16[512,128], index: 14, kind: input, shape index: {}]   ;;  %s3910_s15 = inlined_call_operand.vmem [shape: f32[1,128], index: 15, kind: input, shape index: {}]   ;;  %s3911_s16 = inlined_call_operand.hbm [shape: bf16[128,128], index: 16, kind: input, shape index: {}]   ;;  %s3912_s17 = inlined_call_operand.vmem [shape: f32[1,128], index: 17, kind: input, shape index: {}]   ;;  %s3913_s18 = inlined_call_operand.hbm [shape: f32[2,1,128], index: 18, kind: output, shape index: {}]  }
   0x1   :  { %3920 = sst [smem:[#allocation30_spill]] %s3895_s0 }
   0x2   :  { %3921 = sst [smem:[#allocation31_spill]] %s3896_s1 }
   0x3   :  { %3922 = sst [smem:[#allocation32_spill]] %s3897_s2 }
   0x4   :  { %3923 = sst [smem:[#allocation33_spill]] %s3898_s3 }
   0x5   :  { %3924 = sst [smem:[#allocation34_spill]] %s3899_s4 }
   0x6   :  { %3925 = sst [smem:[#allocation35_spill]] %s3900_s5 }
   0x7   :  { %3926 = sst [smem:[#allocation36_spill]] %s3901_s6 }
   0x8   :  { %3927 = sst [smem:[#allocation37_spill]] %s3903_s8 }
   0x9   :  { %3928 = sst [smem:[#allocation38_spill]] %s3906_s11 }
   0xa   :  { %3929 = sst [smem:[#allocation39_spill]] %s3907_s12 }
   0xb   :  { %3930 = sst [smem:[#allocation40_spill]] %s3908_s13 }
   0xc   :  { %3931 = sst [smem:[#allocation41_spill]] %s3910_s15 }
   0xd   :  { %3932 = sst [smem:[#allocation42_spill]] %s3912_s17 }
   0xe   :  { %3933 = sst [smem:[#allocation43_spill]] %s3913_s18 }
   0xf   :  { %s3934_s29 = sld [smem:[#allocation30_spill]] }
  0x15   :  { %s24_s11 = sshll.u32 %s3934_s29, 4  ;;  %s25_s11 = int_to_ptr.hbm [resolvable:$true] %s24_s11 }
  0x16   :  { %27 = dma.hbm_to_smem %s25_s11, 16, %s3420_s30, [#allocation2] }
  0x17   :  { %3374 = dma.done.wait [#allocation2], 16 }
  0x18   :  { %3375 = vsyncadd [#allocation2], 4294967280 }
  0x19   :  { %30 = sfence }
  0x1a   :  { %31 = vsyncpa [#allocation5], 0 }
  0x1b   :  { %33 = vsyncpa [#allocation5 + $0x1], 0 }
  0x1c   :  { %34 = vsyncpa [#allocation8], 0 }
  0x1d   :  { %35 = vsyncpa [#allocation11], 0 }
  0x1e   :  { %36 = vsyncpa [#allocation14], 0 }
  0x1f   :  { %37 = vsyncpa [#allocation17], 0 }
  0x20   :  { %38 = vsyncpa [#allocation20], 0 }
  0x21   :  { %39 = vsyncpa [#allocation6], 0 }
  0x22   :  { %41 = vsyncpa [#allocation6 + $0x1], 0  ;;  %s3539_s0 = smov 0   ;;  %s3541_s19 = smov 0  }
  0x23   :  { %s3543_s1 = smov 0   ;;  %s3545_s20 = smov 0  }
  0x24 LB: > { %s3935_s22 = sld [smem:[#allocation32_spill]]  ;;  %s3563_s23 = sadd.s32 4294967295, %s3418_s20   ;;  %s3418_s20 = sphi %s3545_s20, %s3963_s20   ;;  %s3414_s1 = sphi %s3543_s1, %s3962_s1   ;;  %s3410_s19 = sphi %s3541_s19, %s3961_s19   ;;  %s3406_s0 = sphi %s3539_s0, %s3960_s0  }
  0x25   : > { %p2256_p0 = scmp.ge.s32.totalorder %s3418_s20, 1  ;;  %p68_p1 = scmp.eq.s32.totalorder %s3563_s23, 0 }
  0x26   : > { %p440_p2 = scmp.lt.s32.totalorder %s3418_s20, 3  ;;  %s3421_s25 = smov [#allocation7]  }
  0x27   : > { %s453_s26 = sshll.u32 %s3421_s25, 4  ;;  %s3937_s4 = sld [smem:[#allocation34_spill]]  ;;  %s454_s26 = int_to_ptr.vmem [resolvable:$true] %s453_s26 }
  0x28   : > { %p3568_p3 = pnand %p2256_p0, %p440_p2  ;;  %s3939_s6 = sld [smem:[#allocation36_spill]] }
  0x29   : > { %s3422_s25 = smov [#allocation10]   ;;  %s3916_s18 = smov 64  }
  0x2a   : > { %s451_s2 = sshll.u32 %s3935_s22, 4  ;;  %p2858_p4 = pneg %p3568_p3  ;;  %s452_s2 = int_to_ptr.hbm [resolvable:$true] %s451_s2 }
  0x2b   : > { %s480_s17 = sshll.u32 %s3422_s25, 4  ;;  %s3918_s15 = smov 4   ;;  %s481_s17 = int_to_ptr.vmem [resolvable:$true] %s480_s17 }
  0x2c   : > { %p3580_p6 = pnand %p2858_p4, %p68_p1  ;;  %s3425_s27 = smov [#allocation13]  }
  0x2d   : > { %s478_s29 = sshll.u32 %s3937_s4, 4  ;;  %s503_s28 = sshll.u32 %s3425_s27, 4  ;;  %s479_s29 = int_to_ptr.hbm [resolvable:$true] %s478_s29  ;;  %s504_s28 = int_to_ptr.vmem [resolvable:$true] %s503_s28 }
  0x2e   : > { %s501_s22 = sshll.u32 %s3939_s6, 4  ;;  %s3940_s12 = sld [smem:[#allocation39_spill]]  ;;  %s502_s22 = int_to_ptr.hbm [resolvable:$true] %s501_s22 }
  0x2f   : > { %2861 = dma.hbm_to_vmem [thread:$0]  (!%p3580_p6), %s452_s2, 128, %s454_s26, [#allocation8], %s3916_s18, %s3916_s18, %s3918_s15  }
  0x30   : > { %2867 = dma.hbm_to_vmem [thread:$0]  (!%p3580_p6), %s479_s29, 16, %s481_s17, [#allocation11]  }
  0x31   : > { %s3426_s25 = smov 192   ;;  %s3427_s6 = smov 12  }
  0x32   : > { %2873 = dma.hbm_to_vmem [thread:$0]  (!%p3580_p6), %s502_s22, 3072, %s504_s28, [#allocation14], %s3426_s25, %s3426_s25, %s3427_s6  }
  0x33   : > { %s3428_s13 = smov [#allocation16]   ;;  %s3429_s26 = smov 256  }
  0x34   : > { %s541_s4 = sshll.u32 %s3940_s12, 4  ;;  %s543_s2 = sshll.u32 %s3428_s13, 4  ;;  %s542_s4 = int_to_ptr.hbm [resolvable:$true] %s541_s4  ;;  %s544_s2 = int_to_ptr.vmem [resolvable:$true] %s543_s2 }
  0x35   : > { %s3430_s18 = smov 16   ;;  %s3941_s3 = sld [smem:[#allocation33_spill]] }
  0x36   : > { %2879 = dma.hbm_to_vmem [thread:$0]  (!%p3580_p6), %s542_s4, 4096, %s544_s2, [#allocation17], %s3429_s26, %s3429_s26, %s3430_s18  }
  0x37   : > { %s3431_s11 = smov [#allocation9]   ;;  %s3942_s5 = sld [smem:[#allocation35_spill]] }
  0x38   : > { %s468_s21 = sshll.u32 %s3431_s11, 4  ;;  %s3432_s13 = smov [#allocation12]   ;;  %s469_s21 = int_to_ptr.vmem [resolvable:$true] %s468_s21 }
  0x39   : > { %s492_s28 = sshll.u32 %s3432_s13, 4  ;;  %s3943_s8 = sld [smem:[#allocation37_spill]]  ;;  %s493_s28 = int_to_ptr.vmem [resolvable:$true] %s492_s28 }
  0x3a   : > { %s558_s15 = sshll.u32 %s3909_s14, 4  ;;  %s3433_s17 = smov [#allocation15]   ;;  %s559_s15 = int_to_ptr.hbm [resolvable:$true] %s558_s15 }
  0x3b   : > { %s466_s27 = sshll.u32 %s3941_s3, 4  ;;  %s520_s29 = sshll.u32 %s3433_s17, 4  ;;  %s467_s27 = int_to_ptr.hbm [resolvable:$true] %s466_s27  ;;  %s521_s29 = int_to_ptr.vmem [resolvable:$true] %s520_s29 }
  0x3c   : > { %2864 = dma.hbm_to_vmem [thread:$0]  (!%p3580_p6), %s467_s27, 16, %s469_s21, [#allocation8]  }
  0x3d   : > { %s490_s22 = sshll.u32 %s3942_s5, 4  ;;  %s3944_s27 = smov 4   ;;  %s491_s22 = int_to_ptr.hbm [resolvable:$true] %s490_s22 }
  0x3e   : > { %2870 = dma.hbm_to_vmem [thread:$0]  (!%p3580_p6), %s491_s22, 16, %s493_s28, [#allocation11]  }
  0x3f   : > { %s518_s18 = sshll.u32 %s3943_s8, 4  ;;  %s3945_s11 = smov 64   ;;  %s519_s18 = int_to_ptr.hbm [resolvable:$true] %s518_s18 }
  0x40   : > { %2876 = dma.hbm_to_vmem [thread:$0]  (!%p3580_p6), %s519_s18, 1024, %s521_s29, [#allocation14], %s3945_s11, %s3945_s11, %s3944_s27  }
  0x41   : > { %s3434_s21 = smov [#allocation18]   ;;  %s575_s28 = sshll.u32 %s3911_s16, 4  ;;  %s576_s28 = int_to_ptr.hbm [resolvable:$true] %s575_s28 }
  0x42   : > { %s560_s6 = sshll.u32 %s3434_s21, 4  ;;  %s3435_s25 = smov [#allocation19]   ;;  %s561_s6 = int_to_ptr.vmem [resolvable:$true] %s560_s6 }
  0x43   : > { %2882 = dma.hbm_to_vmem [thread:$0]  (!%p3580_p6), %s559_s15, 4096, %s561_s6, [#allocation17], %s3945_s11, %s3945_s11, %s3944_s27  }
  0x44   : > { %s577_s4 = sshll.u32 %s3435_s25, 4  ;;  %s2255_s18 = sadd.s32 4294967294, %s3418_s20   ;;  %s578_s4 = int_to_ptr.vmem [resolvable:$true] %s577_s4 }
  0x45   : > { %2885 = dma.hbm_to_vmem [thread:$0]  (!%p3580_p6), %s576_s28, 1024, %s578_s4, [#allocation20], %s3945_s11, %s3945_s11, %s3944_s27  }
  0x46   : > { %s3637_s2 = sadd.s32 1, %s3418_s20   ;;  %s54_s26 = sadd.s32 1, %s3414_s1 }
  0x47   : > { %s51_s17 = ssub.s32 %s3418_s20, %s3637_s2  ;;  %p61_p7 = scmp.ne.s32.totalorder %s3414_s1, %s3410_s19 }
  0x48   : > { %p52_p8 = scmp.eq.s32.totalorder %s51_s17, 0  ;;  %p62_p9 = scmp.eq.s32.totalorder %s3418_s20, 0 }
  0x49   : > { %p67_p10 = scmp.ne.s32.totalorder %s3410_s19, %s3406_s0  ;;  %p427_p11 = scmp.eq.s32.totalorder %s3563_s23, 1 }
  0x4a   : > { %s3649_s15 = scalar_select %p52_p8, %s3414_s1, %s54_s26  }
  0x4b   : > { %p3651_p12 = por %p62_p9, %p61_p7  ;;  %p3657_p13 = por %p68_p1, %p67_p10 }
  0x4c   : > { %p3661_p0 = por %p427_p11, %p61_p7  ;;  %p433_p2 = scmp.eq.s32.totalorder %s2255_s18, 1 }
  0x4d   : > { %p2903_p4 = scmp.lt.s32.totalorder %s3418_s20, 2  ;;  %s594_s11 = sand.u32 1, %s3414_s1  }
  0x4e   : > { %p3667_p6 = por %p433_p2, %p67_p10  ;;  %s2267_s6 = sshll.u32 %s594_s11, 4 }
  0x4f   : > { %s2712_s22 = sshll.u32 %s3418_s20, 4  ;;  %s3950_s25 = sld [smem:[#allocation31_spill]] }
  0x50   : > { %s598_s17 = scalar_lea.vmem [#allocation4], %s2267_s6  ;;  %p3677_p7 = pnand %p2903_p4, %p3651_p12 }
  0x51   : > { %s606_s3 = sshll.u32 %s598_s17, 4  ;;  %s595_s5 = scalar_lea.sflag [#allocation5], %s594_s11  ;;  %s607_s3 = int_to_ptr.vmem [resolvable:$true] %s606_s3 }
  0x52   : > { %p3304_p9 = pneg %p3677_p7 }
  0x55   : > { %s603_s4 = scalar_lea.hbm %s3950_s25, %s2712_s22  ;;  %s3307_s13 = scalar_lea.hbm %s3950_s25, 32 }
  0x56   : > { %s604_s26 = sshll.u32 %s603_s4, 4  ;;  %s605_s26 = int_to_ptr.hbm [resolvable:$true] %s604_s26 }
  0x57   : > { %s3300_s8 = sshra.s32 %s605_s26, 4  ;;  %s3301_s8 = int_to_ptr.hbm [resolvable:$true] %s3300_s8 }
  0x58   : > { %s3302_s12 = scalar_lea.hbm %s3301_s8, 16  ;;  %p3308_p12 = scmp.lt.s32.totalorder %s3301_s8, %s3950_s25 }
  0x59   : > { %p3303_p8 = scmp.ne.s32.totalorder %s3301_s8, %s3302_s12  ;;  %p3309_p2 = scmp.lt.s32.totalorder %s3307_s13, %s3302_s12 }
  0x5b   : > { %p3305_p10 = pnand %p3304_p9, %p3303_p8  ;;  %p3310_p4 = por %p3309_p2, %p3308_p12 }
  0x5d   : > { %p3306_p11 = pneg %p3305_p10 }
  0x5f   : > { %p3311_p5 = pnand %p3310_p4, %p3306_p11 }
  0x61   : > { %3314 = shalt.err (!%p3311_p5)
}
  0x62   : > { %s3436_s11 = smov 128   ;;  %s3437_s4 = smov 8  }
  0x63   : > { %2889 = dma.hbm_to_vmem [thread:$0]  (!%p3677_p7), %s605_s26, 256, %s607_s3, %s595_s5, %s3436_s11, %s3436_s11, %s3437_s4  }
  0x64   : > { %618 = sbr.rel (%p3568_p3) target bundleno = 2180 (0x884), region = 88  ;;  %s3694_s17 = sand.u32 (!%p3568_p3), 1, %s3410_s19  }
  0x65   : > { %s2271_s22 = sshll.u32 (!%p3568_p3), %s3694_s17, 4  ;;  %s621_s8 = scalar_lea.sflag (!%p3568_p3), [#allocation5], %s3694_s17 }
  0x66   : > { %s624_s12 = scalar_lea.vmem (!%p3568_p3), [#allocation4], %s2271_s22 }
  0x69   : > { %3377 = dma.done.wait (%p3657_p13), %s621_s8, 256  }
  0x6a   : > { %3379 = vsyncadd (%p3657_p13), %s621_s8, 4294967040 }
  0x6b   : > { %3381 = dma.done.wait (%p68_p1), [#allocation8], 144  }
  0x6c   : > { %3383 = vsyncadd (%p68_p1), [#allocation8], 4294967152 }
  0x6d   : > { %3385 = dma.done.wait (%p68_p1), [#allocation11], 32  }
  0x6e   : > { %3387 = vsyncadd (%p68_p1), [#allocation11], 4294967264 }
  0x6f   : > { %3389 = dma.done.wait (%p68_p1), [#allocation14], 4096  }
  0x70   : > { %3391 = vsyncadd (%p68_p1), [#allocation14], 4294963200 }
  0x71   : > { %3393 = dma.done.wait (%p68_p1), [#allocation17], 8192  }
  0x72   : > { %3395 = vsyncadd (%p68_p1), [#allocation17], 4294959104 }
  0x73   : > { %3397 = dma.done.wait (%p68_p1), [#allocation20], 1024  }
  0x74   : > { %3399 = vsyncadd (%p68_p1), [#allocation20], 4294966272  ;;  %v2713_v0 = vld [vmem:[#allocation7] sm:$0xff]  ;;  %v723_v2 = vld [vmem:[%s624_s12 + $0x8] sm:$0xff]  ;;  %vm737_vm0 = vcmask 130048   ;;  %v3438_v9 = vmov 128.0  }
  0x75   : > { %v722_v1 = vld [vmem:[%s624_s12] sm:$0xff]  ;;  %748 = vmatpush.bf16.msra.mxu0 %v2713_v0  ;;  %v2967_v4 = vld [vmem:[#allocation9] ss:$0 sm:$0xff]  ;;  %2974 = vrcp.f32 %v3438_v9  ;;  %v2735_v26 = vld [vmem:[#allocation13 + $0xac] sm:$0xf]  ;;  %vm1150_vm8 = vcmask 523264  }
  0x76   : > { %v726_v3 = vpack.c.bf16 %v723_v2, %v722_v1  ;;  %v2372_v24 = vld [vmem:[#allocation13 + $0xa8] sm:$0xf]  ;;  %v2736_v25 = vld [vmem:[#allocation13 + $0xb0] sm:$0xf0]  ;;  %v2374_v28 = vld [vmem:[#allocation13 + $0xb4] sm:$0xf0] }
  0x77   : > { %v2373_v27 = vor.u32 %v2736_v25, %v2372_v24  ;;  %v2380_v29 = vld [vmem:[#allocation13 + $0xb0] sm:$0xf]  ;;  %v2737_v30 = vld [vmem:[#allocation13 + $0xb8] sm:$0xf0]  ;;  %v2377_v31 = vor.u32 %v2735_v26, %v2374_v28  ;;  %v2732_v35 = vld [vmem:[#allocation13 + $0x94] sm:$0xf] }
  0x78   : > { %2285 = vmatmul.msk.bf16.vlgmr.msra.gmra.mxu0 %vm737_vm0, %v726_v3  ;;  %v2381_v32 = vor.u32 %v2737_v30, %v2380_v29  ;;  %v2360_v33 = vld [vmem:[#allocation13 + $0x90] sm:$0xf]  ;;  %v2733_v34 = vld [vmem:[#allocation13 + $0x98] sm:$0xf0]  ;;  %v2362_v37 = vld [vmem:[#allocation13 + $0x9c] sm:$0xf0] }
  0x79   : > { %1100 = vmatpush.bf16.msra.mxu1 %v2373_v27  ;;  %1114 = vmatpush.bf16.msra.mxu2 %v2377_v31  ;;  %v2361_v36 = vor.u32 %v2733_v34, %v2360_v33  ;;  %v2368_v38 = vld [vmem:[#allocation13 + $0x98] sm:$0xf]  ;;  %v2734_v39 = vld [vmem:[#allocation13 + $0xa0] sm:$0xf0]  ;;  %v2365_v40 = vor.u32 %v2732_v35, %v2362_v37  ;;  %v2729_v44 = vld [vmem:[#allocation13 + $0x7c] sm:$0xf] }
  0x7a   : > { %1128 = vmatpush.bf16.msra.mxu3 %v2381_v32  ;;  %v2369_v41 = vor.u32 %v2734_v39, %v2368_v38  ;;  %v2348_v42 = vld [vmem:[#allocation13 + $0x78] sm:$0xf]  ;;  %v2730_v43 = vld [vmem:[#allocation13 + $0x80] sm:$0xf0]  ;;  %v2350_v46 = vld [vmem:[#allocation13 + $0x84] sm:$0xf0] }
  0x7b   : > { %v2975_v10 = vpop.eup %2974  ;;  %v2349_v45 = vor.u32 %v2730_v43, %v2348_v42  ;;  %v2356_v47 = vld [vmem:[#allocation13 + $0x80] sm:$0xf]  ;;  %v2731_v48 = vld [vmem:[#allocation13 + $0x88] sm:$0xf0]  ;;  %v2353_v49 = vor.u32 %v2729_v44, %v2350_v46  ;;  %v2726_v53 = vld [vmem:[#allocation13 + $0x64] sm:$0xf] }
  0x7c   : > { %v912_v11 = vmul.f32 128.0, %v2975_v10  ;;  %vm916_vm1 = vweird.f32 %v2975_v10  ;;  %v2357_v50 = vor.u32 %v2731_v48, %v2356_v47  ;;  %v2336_v51 = vld [vmem:[#allocation13 + $0x60] sm:$0xf]  ;;  %v2727_v52 = vld [vmem:[#allocation13 + $0x68] sm:$0xf0]  ;;  %s3439_s24 = smov 64  }
  0x7d   : > { %1101 = vmatpush.bf16.msra.mxu1 %v2361_v36  ;;  %1115 = vmatpush.bf16.msra.mxu2 %v2365_v40  ;;  %v2337_v54 = vor.u32 %v2727_v52, %v2336_v51  ;;  %v2338_v55 = vld [vmem:[#allocation13 + $0x6c] sm:$0xf0]  ;;  %v2344_v56 = vld [vmem:[#allocation13 + $0x68] sm:$0xf]  ;;  %v2728_v57 = vld [vmem:[#allocation13 + $0x70] sm:$0xf0] }
  0x7e   : > { %v913_v12 = vsub.f32 1.0, %v912_v11  ;;  %1129 = vmatpush.bf16.msra.mxu3 %v2369_v41  ;;  %v2341_v58 = vor.u32 %v2726_v53, %v2338_v55  ;;  %v2345_v59 = vor.u32 %v2728_v57, %v2344_v56  ;;  %v2324_v60 = vld [vmem:[#allocation13 + $0x48] sm:$0xf]  ;;  %v2724_v61 = vld [vmem:[#allocation13 + $0x50] sm:$0xf0]  ;;  %s721_s29 = sld [smem:[#allocation3 + %s3563_s23]] }
  0x7f   : > { %v2723_v62 = vld [vmem:[#allocation13 + $0x4c] sm:$0xf]  ;;  %v2325_v63 = vor.u32 %v2724_v61, %v2324_v60  ;;  %v2326_v0 = vld [vmem:[#allocation13 + $0x54] sm:$0xf0]  ;;  %v2332_v1 = vld [vmem:[#allocation13 + $0x50] sm:$0xf] }
  0x80   : > { %v914_v13 = vmul.f32 %v2975_v10, %v913_v12  ;;  %v2725_v2 = vld [vmem:[#allocation13 + $0x58] sm:$0xf0]  ;;  %v2329_v3 = vor.u32 %v2723_v62, %v2326_v0  ;;  %v2720_v9 = vld [vmem:[#allocation13 + $0x34] sm:$0xf]  ;;  %v2314_v11 = vld [vmem:[#allocation13 + $0x3c] sm:$0xf0] }
  0x81   : > { %1102 = vmatpush.bf16.msra.mxu1 %v2349_v45  ;;  %1116 = vmatpush.bf16.msra.mxu2 %v2353_v49  ;;  %v2320_v12 = vld [vmem:[#allocation13 + $0x38] sm:$0xf]  ;;  %v2308_v24 = vld [vmem:[#allocation13 + $0x20] sm:$0xf]  ;;  %v2719_v25 = vld [vmem:[#allocation13 + $0x28] sm:$0xf0] }
  0x82   : > { %v915_v14 = vadd.f32 %v2975_v10, %v914_v13  ;;  %1130 = vmatpush.bf16.msra.mxu3 %v2357_v50  ;;  %v2722_v13 = vld [vmem:[#allocation13 + $0x40] sm:$0xf0]  ;;  %v2309_v27 = vor.u32 %v2719_v25, %v2308_v24  ;;  %v2288_v28 = vld [vmem:[#allocation13] sm:$0xf]  ;;  %v2715_v29 = vld [vmem:[#allocation13 + $0x8] sm:$0xf0] }
  0x83   : > { %v2714_v30 = vld [vmem:[#allocation13 + $0x4] sm:$0xf]  ;;  %v2289_v32 = vor.u32 %v2715_v29, %v2288_v28  ;;  %v2290_v33 = vld [vmem:[#allocation13 + $0xc] sm:$0xf0]  ;;  %v2296_v34 = vld [vmem:[#allocation13 + $0x8] sm:$0xf] }
  0x84   : > { %v3729_v15 = vsel %vm916_vm1, %v2975_v10, %v915_v14  ;;  %v2317_v14 = vor.u32 %v2720_v9, %v2314_v11  ;;  %v2716_v35 = vld [vmem:[#allocation13 + $0x10] sm:$0xf0]  ;;  %v2293_v37 = vor.u32 %v2714_v30, %v2290_v33  ;;  %v2968_v56 = vld [vmem:[#allocation10] ss:$0 sm:$0xff]  ;;  %v2969_v61 = vld [vmem:[#allocation12] ss:$0 sm:$0xff]  ;;  %v1146_v33 = vstv %s721_s29 }
  0x85   : > { %1103 = vmatpush.bf16.msra.mxu1 %v2337_v54  ;;  %1117 = vmatpush.bf16.msra.mxu2 %v2341_v58  ;;  %v2297_v38 = vor.u32 %v2716_v35, %v2296_v34  ;;  %s3954_s11 = sld [smem:[#allocation38_spill]]  ;;  %s719_s30 = scalar_lea.vmem [#allocation21], %s3694_s17 }
  0x86   : > { %1131 = vmatpush.bf16.msra.mxu3 %v2345_v59  ;;  %s3955_s8 = sld [smem:[#allocation40_spill]]  ;;  %s2091_s22 = scalar_lea.sflag [#allocation6], %s3694_s17 }
  0x87   : > { %s3956_s5 = sld [smem:[#allocation41_spill]] }
  0x88   : > { %s3957_s26 = sld [smem:[#allocation43_spill]] }
  0x89   : > { %1104 = vmatpush.bf16.msra.mxu1 %v2325_v63  ;;  %1118 = vmatpush.bf16.msra.mxu2 %v2329_v3  ;;  %s3958_s28 = sld [smem:[#allocation42_spill]] }
  0x8d   : > { %1119 = vmatpush.bf16.msra.mxu2 %v2317_v14 }
  0x8e   : > { %s2099_s18 = scalar_lea.hbm %s3957_s26, %s3563_s23 }
  0x8f   : > { %s2103_s4 = sshll.u32 %s2099_s18, 4  ;;  %s2104_s4 = int_to_ptr.hbm [resolvable:$true] %s2103_s4 }
  0xf5   : > { %v750_v5 = vpop.f32.mrf.mxu0 }
  0xf6   : > { %v3723_v6 = vadd.f32 %v2967_v4, %v750_v5  ;;  %v2312_v5 = vld [vmem:[#allocation13 + $0x30] sm:$0xf] }
  0xf8   : > { %907 = vadd.xlane.f32.xlu0 %v3723_v6 }
  0xfd   : > { %v752_v7 = vpop.f32.mrf.mxu0 }
  0xfe   : > { %v3726_v8 = vadd.f32 %v2967_v4, %v752_v7  ;;  %v2333_v4 = vor.u32 %v2725_v2, %v2332_v1  ;;  %v2721_v7 = vld [vmem:[#allocation13 + $0x38] sm:$0xf0] }
  0xff   : > { %v2313_v10 = vor.u32 %v2721_v7, %v2312_v5 }
 0x100   : > { %909 = vadd.xlane.f32.xlu0 %v3726_v8  ;;  %1132 = vmatpush.bf16.msra.mxu3 %v2333_v4 }
 0x101   : > { %1105 = vmatpush.bf16.msra.mxu1 %v2313_v10 }
 0x16b   : > { %v908_v16 = vpop.xlane.xlu0 %907 }
 0x16c   : > { %v918_v17 = vmul.f32 %v3729_v15, %v908_v16  ;;  %v2321_v16 = vor.u32 %v2722_v13, %v2320_v12 }
 0x16e   : > { %v3733_v18 = vsub.f32 %v3723_v6, %v918_v17  ;;  %1133 = vmatpush.bf16.msra.mxu3 %v2321_v16  ;;  %v2300_v17 = vld [vmem:[#allocation13 + $0x18] sm:$0xf] }
 0x170   : > { %v922_v19 = vmul.f32 %v3733_v18, %v3733_v18 }
 0x172   : > { %924 = vadd.xlane.f32.xlu1 %v922_v19  ;;  %v2718_v19 = vld [vmem:[#allocation13 + $0x20] sm:$0xf0]  ;;  %1134 = vmatpush.bf16.msra.mxu3 %v2309_v27 }
 0x173   : > { %v910_v20 = vpop.xlane.xlu0 %909 }
 0x174   : > { %v919_v21 = vmul.f32 %v3729_v15, %v910_v20  ;;  %v2717_v20 = vld [vmem:[#allocation13 + $0x1c] sm:$0xf] }
 0x176   : > { %v3739_v22 = vsub.f32 %v3726_v8, %v919_v21  ;;  %v2301_v21 = vor.u32 %v2718_v19, %v2300_v17  ;;  %1135 = vmatpush.bf16.msra.mxu3 %v2297_v38 }
 0x178   : > { %v923_v23 = vmul.f32 %v3739_v22, %v3739_v22  ;;  %1106 = vmatpush.bf16.msra.mxu1 %v2301_v21 }
 0x17a   : > { %926 = vadd.xlane.f32.xlu1 %v923_v23  ;;  %v2302_v23 = vld [vmem:[#allocation13 + $0x24] sm:$0xf0] }
 0x17b   : > { %v2305_v26 = vor.u32 %v2717_v20, %v2302_v23 }
 0x17c   : > { %1107 = vmatpush.bf16.msra.mxu1 %v2289_v32 }
 0x17d   : > { %1120 = vmatpush.bf16.msra.mxu2 %v2305_v26 }
 0x181   : > { %1121 = vmatpush.bf16.msra.mxu2 %v2293_v37 }
 0x1e5   : > { %v925_v31 = vpop.xlane.xlu1 %924 }
 0x1e6   : > { %v928_v36 = vmul.f32 %v925_v31, %v3729_v15  ;;  %v1144_v31 = vlaneseq }
 0x1e8   : > { %v930_v39 = vadd.f32 1e-05, %v928_v36  ;;  %v1145_v32 = vand.u32 127, %v1144_v31 }
 0x1ea   : > { %2976 = vrsqrt.f32 %v930_v39  ;;  %vm938_vm3 = vweird.f32 %v930_v39  ;;  %vm3755_vm9 = vcmp.lt.s32.totalorder %v1145_v32, %v1146_v33 }
 0x1ed   : > { %v927_v40 = vpop.xlane.xlu1 %926 }
 0x1ee   : > { %v929_v41 = vmul.f32 %v927_v40, %v3729_v15 }
 0x1f0   : > { %v2977_v42 = vpop.eup %2976  ;;  %v931_v43 = vadd.f32 1e-05, %v929_v41 }
 0x1f1   : > { %v933_v44 = vmul.f32 %v2977_v42, %v930_v39  ;;  %vm939_vm2 = vweird.f32 %v2977_v42 }
 0x1f2   : > { %2978 = vrsqrt.f32 %v931_v43  ;;  %vm940_vm4 = vmor %vm938_vm3, %vm939_vm2  ;;  %vm948_vm6 = vweird.f32 %v931_v43 }
 0x1f3   : > { %v934_v45 = vmul.f32 %v2977_v42, %v933_v44 }
 0x1f5   : > { %v935_v46 = vmul.f32 0.5, %v934_v45 }
 0x1f7   : > { %v936_v47 = vsub.f32 1.5, %v935_v46 }
 0x1f8   : > { %v2979_v48 = vpop.eup %2978 }
 0x1f9   : > { %v937_v49 = vmul.f32 %v2977_v42, %v936_v47  ;;  %v943_v50 = vmul.f32 %v2979_v48, %v931_v43  ;;  %vm949_vm5 = vweird.f32 %v2979_v48 }
 0x1fa   : > { %vm950_vm7 = vmor %vm948_vm6, %vm949_vm5 }
 0x1fb   : > { %v944_v51 = vmul.f32 %v2979_v48, %v943_v50  ;;  %v941_v52 = vsel %vm940_vm4, %v2977_v42, %v937_v49 }
 0x1fc   : > { %v952_v55 = vmul.f32 %v941_v52, %v3733_v18  ;;  %v789_v18 = vld [vmem:[%s3902_s7] sm:$0x7] }
 0x1fd   : > { %v945_v53 = vmul.f32 0.5, %v944_v51  ;;  %v967_v5 = vperm.slane %v789_v18, 1  ;;  %v968_v7 = vperm.slane %v789_v18, 2  ;;  %v966_v10 = vperm.slane %v789_v18, 0  ;;  %v2745_v18 = vld [vmem:[#allocation15 + $0x38] sm:$0xff] }
 0x1fe   : > { %v957_v60 = vmul.f32 %v2968_v56, %v952_v55 }
 0x1ff   : > { %v946_v54 = vsub.f32 1.5, %v945_v53 }
 0x200   : > { %v962_v63 = vadd.f32 %v2969_v61, %v957_v60 }
 0x201   : > { %v947_v57 = vmul.f32 %v2979_v48, %v946_v54 }
 0x203   : > { %v951_v58 = vsel %vm950_vm7, %v2979_v48, %v947_v57 }
 0x204   : > { %v953_v59 = vmul.f32 %v951_v58, %v3739_v22 }
 0x206   : > { %v958_v62 = vmul.f32 %v2968_v56, %v953_v59 }
 0x208   : > { %v963_v0 = vadd.f32 %v2969_v61, %v958_v62 }
 0x20a   : > { %v964_v1 = vpack.c.bf16 %v963_v0, %v962_v63 }
 0x20c   : > { %1108 = vmatmul.bf16.vlgmr.msra.gmra.mxu1 %v964_v1  ;;  %1122 = vmatmul.bf16.vlgmr.msra.gmra.mxu2 %v964_v1 }
 0x20d   : > { %1136 = vmatmul.bf16.vlgmr.msra.gmra.mxu3 %v964_v1 }
 0x289   : > { %v1109_v2 = vpop.f32.mrf.mxu1 }
 0x28a   : > { %v1110_v20 = vadd.f32 %v1109_v2, %v966_v10 }
 0x28c   : > { %v1142_v25 = vmul.f32 0.125, %v1110_v20 }
 0x28f   : > { %v1123_v3 = vpop.f32.mrf.mxu2 }
 0x290   : > { %v1137_v4 = vpop.f32.mrf.mxu3  ;;  %v1124_v11 = vadd.f32 %v1123_v3, %v967_v5 }
 0x291   : > { %v1111_v9 = vpop.f32.mrf.mxu1  ;;  %v1138_v16 = vadd.f32 %v1137_v4, %v968_v7 }
 0x292   : > { %v1112_v17 = vadd.f32 %v1111_v9, %v966_v10  ;;  %v2740_v9 = vld [vmem:[#allocation15 + $0x10] sm:$0xff]  ;;  %v2739_v10 = vld [vmem:[#allocation15 + $0x8] sm:$0xff] }
 0x294   : > { %v1143_v24 = vmul.f32 0.125, %v1112_v17 }
 0x296   : > { %v1148_v26 = vpack.c.bf16 %v1143_v24, %v1142_v25 }
 0x297   : > { %v1125_v22 = vpop.f32.mrf.mxu2 }
 0x298   : > { %v1126_v12 = vadd.f32 %v1125_v22, %v967_v5  ;;  %v1139_v13 = vpop.f32.mrf.mxu3  ;;  %v2741_v5 = vld [vmem:[#allocation15 + $0x18] sm:$0xff]  ;;  %v2743_v22 = vld [vmem:[#allocation15 + $0x28] sm:$0xff] }
 0x299   : > { %v1140_v14 = vadd.f32 %v1139_v13, %v968_v7  ;;  %v2744_v7 = vld [vmem:[#allocation15 + $0x30] sm:$0xff] }
 0x29a   : > { %v1149_v19 = vpack.c.bf16 %v1126_v12, %v1124_v11  ;;  %v2742_v11 = vld [vmem:[#allocation15 + $0x20] sm:$0xff] }
 0x29b   : > { %v1192_v21 = vpack.c.bf16 %v1140_v14, %v1138_v16  ;;  %v2738_v12 = vld [vmem:[#allocation15] sm:$0xff] }
 0x29c   : > { %1219 = vrot.lane.b32.xlu2 %v1149_v19, %s3439_s24  ;;  %v1155_v23 = vsel %vm1150_vm8, %v1149_v19, 0 }
 0x29d   : > { %1164 = vmatpush.bf16.xpose.msrb.mxu0 %v1155_v23 }
 0x2a4   : > { %1216 = vrot.lane.b32.xlu2 %v1148_v26, %s3439_s24  ;;  %2382 = vmatmul.msk.bf16.vlgmr.msrb.gmra.mxu0 %vm1150_vm8, %v1148_v26 }
 0x2a5   : > { %1203 = vmatpush.bf16.msra.mxu0 %v1192_v21 }
 0x2a9   : > { %1360 = vmatpush.bf16.msrb.mxu0 %v2741_v5  ;;  %v2773_v5 = vld [vmem:[#allocation16 + $0xd4] sm:$0xf0] }
 0x2ac   : > { %1263 = vrot.lane.b32.xlu2 %v1192_v21, %s3439_s24 }
 0x2ad   : > { %1361 = vmatpush.bf16.msrb.mxu0 %v2740_v9 }
 0x2b1   : > { %1362 = vmatpush.bf16.msrb.mxu0 %v2739_v10  ;;  %v2528_v10 = vld [vmem:[#allocation16 + $0xd8] sm:$0xf0] }
 0x2b5   : > { %1363 = vmatpush.bf16.msrb.mxu0 %v2738_v12  ;;  %v2502_v12 = vld [vmem:[#allocation16 + $0xa0] sm:$0xf] }
 0x2f6   : > { %v1220_v27 = vpop.permute.xlu2 %1219 }
 0x2f7   : > { %v1225_v28 = vsel %vm1150_vm8, %v1220_v27, 0 }
 0x2f8   : > { %1234 = vmatpush.bf16.xpose.msrb.mxu1 %v1225_v28 }
 0x2fe   : > { %v1217_v29 = vpop.permute.xlu2 %1216 }
 0x2ff   : > { %2384 = vmatmul.msk.bf16.vlgmr.msrb.gmra.mxu1 %vm1150_vm8, %v1217_v29 }
 0x306   : > { %v1264_v30 = vpop.permute.xlu2 %1263 }
 0x307   : > { %1276 = vmatpush.bf16.msrb.mxu3 %v1264_v30 }
 0x30b   : > { %1319 = vmatpush.bf16.msra.mxu3 %v2745_v18  ;;  %v2526_v18 = vld [vmem:[#allocation16 + $0xc8] sm:$0xf] }
 0x30c   : > { %v2527_v9 = vor.u32 %v2773_v5, %v2526_v18  ;;  %v2440_v5 = vld [vmem:[#allocation16 + $0x30] sm:$0xf0] }
 0x30f   : > { %1320 = vmatpush.bf16.msra.mxu3 %v2744_v7 }
 0x313   : > { %1321 = vmatpush.bf16.msra.mxu3 %v2743_v22  ;;  %v2771_v22 = vld [vmem:[#allocation16 + $0xcc] sm:$0xf] }
 0x317   : > { %1322 = vmatpush.bf16.msra.mxu3 %v2742_v11  ;;  %v2531_v11 = vor.u32 %v2771_v22, %v2528_v10 }
 0x321   : > { %v1166_v37 = vpop.f32.mrf.mxu0 }
 0x322   : > { %v1171_v39 = vsel %vm3755_vm9, %v1166_v37, -1e+30 }
 0x323   : > { %v1173_v43 = vsel %vm737_vm0, %v1171_v39, -inf }
 0x329   : > { %v1168_v44 = vpop.f32.mrf.mxu0 }
 0x32a   : > { %v1172_v45 = vsel %vm3755_vm9, %v1168_v44, -1e+30 }
 0x32b   : > { %v1176_v46 = vsel %vm737_vm0, %v1172_v45, -inf }
 0x37c   : > { %v1236_v35 = vpop.f32.mrf.mxu1 }
 0x37d   : > { %v1241_v36 = vsel %vm3755_vm9, %v1236_v35, -1e+30 }
 0x37e   : > { %v1243_v38 = vsel %vm737_vm0, %v1241_v36, -inf }
 0x37f   : > { %1244 = vmax.xlane.f32.xlu0 %v1243_v38  ;;  %v2970_v38 = vld [vmem:[%s3904_s9] ss:$0 sm:$0xff] }
 0x384   : > { %v1238_v40 = vpop.f32.mrf.mxu1 }
 0x385   : > { %v1242_v41 = vsel %vm3755_vm9, %v1238_v40, -1e+30 }
 0x386   : > { %v1246_v42 = vsel %vm737_vm0, %v1242_v41, -inf }
 0x387   : > { %1247 = vmax.xlane.f32.xlu1 %v1246_v42  ;;  %1174 = vmax.xlane.f32.xlu0 %v1173_v43 }
 0x38f   : > { %1177 = vmax.xlane.f32.xlu1 %v1176_v46 }
 0x3f2   : > { %v1245_v47 = vpop.xlane.xlu0 %1244 }
 0x3f3   : > { %v1249_v48 = vsub.f32 %v1241_v36, %v1245_v47 }
 0x3f5   : > { %v1251_v49 = vmul.f32 1.442695, %v1249_v48 }
 0x3f7   : > { %2980 = vpow2.f32 %v1251_v49 }
 0x3fa   : > { %v1248_v50 = vpop.xlane.xlu1 %1247  ;;  %v1175_v51 = vpop.xlane.xlu0 %1174 }
 0x3fb   : > { %v1250_v52 = vsub.f32 %v1242_v41, %v1248_v50  ;;  %v1179_v53 = vsub.f32 %v1171_v39, %v1175_v51 }
 0x3fd   : > { %v2981_v54 = vpop.eup %2980  ;;  %v1253_v55 = vmul.f32 1.442695, %v1250_v52  ;;  %v1181_v56 = vmul.f32 1.442695, %v1179_v53  ;;  %v2534_v52 = vld [vmem:[#allocation16 + $0xe0] sm:$0xf] }
 0x3fe   : > { %v1255_v57 = vsel %vm737_vm0, %v2981_v54, 0.0  ;;  %v2776_v53 = vld [vmem:[#allocation16 + $0xec] sm:$0xf0] }
 0x3ff   : > { %2982 = vpow2.f32 %v1253_v55  ;;  %1256 = vadd.xlane.f32.xlu2 %v1255_v57  ;;  %v2535_v55 = vor.u32 %v2776_v53, %v2534_v52  ;;  %v2542_v57 = vld [vmem:[#allocation16 + $0xe8] sm:$0xf]  ;;  %v2480_v52 = vld [vmem:[#allocation16 + $0x78] sm:$0xf0] }
 0x400   : > { %2984 = vpow2.f32 %v1181_v56  ;;  %v2536_v56 = vld [vmem:[#allocation16 + $0xf0] sm:$0xf0] }
 0x401   : > { %1597 = vmatpush.bf16.msra.mxu1 %v2535_v55  ;;  %v2756_v55 = vld [vmem:[#allocation16 + $0x4c] sm:$0xf0] }
 0x402   : > { %v1178_v58 = vpop.xlane.xlu1 %1177 }
 0x403   : > { %v1180_v59 = vsub.f32 %v1172_v45, %v1178_v58  ;;  %v2777_v58 = vld [vmem:[#allocation16 + $0xf4] sm:$0xf0] }
 0x405   : > { %v2983_v60 = vpop.eup %2982  ;;  %v1183_v61 = vmul.f32 1.442695, %v1180_v59 }
 0x406   : > { %v2985_v62 = vpop.eup %2984  ;;  %v1258_v63 = vsel %vm737_vm0, %v2983_v60, 0.0  ;;  %v1261_v0 = vpack.c.bf16 %v2983_v60, %v2981_v54  ;;  %v2774_v54 = vld [vmem:[#allocation16 + $0xe4] sm:$0xf]  ;;  %v2543_v60 = vor.u32 %v2777_v58, %v2542_v57  ;;  %v2456_v58 = vld [vmem:[#allocation16 + $0x50] sm:$0xf0] }
 0x407   : > { %2986 = vpow2.f32 %v1183_v61  ;;  %1259 = vadd.xlane.f32.xlu0 %v1258_v63  ;;  %v1185_v1 = vsel %vm737_vm0, %v2985_v62, 0.0  ;;  %v2539_v59 = vor.u32 %v2774_v54, %v2536_v56  ;;  %v2775_v61 = vld [vmem:[#allocation16 + $0xec] sm:$0xf]  ;;  %v2454_v54 = vld [vmem:[#allocation16 + $0x40] sm:$0xf] }
 0x408   : > { %1186 = vadd.xlane.f32.xlu1 %v1185_v1  ;;  %2385 = vmatmul.msk.bf16.vlgmr.msrb.gmra.mxu3 %vm737_vm0, %v1261_v0  ;;  %v2518_v0 = vld [vmem:[#allocation16 + $0xc0] sm:$0xf]  ;;  %v2772_v1 = vld [vmem:[#allocation16 + $0xcc] sm:$0xf0]  ;;  %v2754_v56 = vld [vmem:[#allocation16 + $0x44] sm:$0xf]  ;;  %v2455_v57 = vor.u32 %v2756_v55, %v2454_v54 }
 0x409   : > { %1611 = vmatpush.bf16.msrb.mxu2 %v2539_v59  ;;  %1625 = vmatpush.bf16.msrb.mxu3 %v2543_v60  ;;  %v2462_v59 = vld [vmem:[#allocation16 + $0x48] sm:$0xf]  ;;  %v2757_v60 = vld [vmem:[#allocation16 + $0x54] sm:$0xf0]  ;;  %v2972_v55 = vld [vmem:[%s3954_s11] ss:$0 sm:$0xff] }
 0x40a   : > { %s2101_s11 = sshll.u32 %s719_s30, 4  ;;  %s2102_s11 = int_to_ptr.vmem [resolvable:$true] %s2101_s11 }
 0x40d   : > { %v2987_v2 = vpop.eup %2986  ;;  %1626 = vmatpush.bf16.msrb.mxu3 %v2527_v9  ;;  %v2753_v9 = vld [vmem:[#allocation16 + $0x34] sm:$0xf0] }
 0x40e   : > { %v1191_v3 = vpack.c.bf16 %v2987_v2, %v2985_v62  ;;  %v1188_v4 = vsel %vm737_vm0, %v2987_v2, 0.0  ;;  %v2544_v62 = vld [vmem:[#allocation16 + $0xf8] sm:$0xf0]  ;;  %v2770_v2 = vld [vmem:[#allocation16 + $0xc4] sm:$0xf] }
 0x40f   : > { %1189 = vadd.xlane.f32.xlu0 %v1188_v4  ;;  %v2547_v63 = vor.u32 %v2775_v61, %v2544_v62  ;;  %v2520_v4 = vld [vmem:[#allocation16 + $0xd0] sm:$0xf0]  ;;  %v2459_v61 = vor.u32 %v2754_v56, %v2456_v58  ;;  %v2463_v62 = vor.u32 %v2757_v60, %v2462_v59  ;;  %v2809_v60 = vld [vmem:[#allocation18 + $0xf8] sm:$0xff] }
 0x410   : > { %2383 = vmatmul.msk.bf16.vlgmr.msra.gmra.mxu0 %vm737_vm0, %v1191_v3  ;;  %v2519_v3 = vor.u32 %v2772_v1, %v2518_v0  ;;  %v2523_v7 = vor.u32 %v2770_v2, %v2520_v4  ;;  %v2464_v0 = vld [vmem:[#allocation16 + $0x58] sm:$0xf0]  ;;  %v2438_v2 = vld [vmem:[#allocation16 + $0x20] sm:$0xf]  ;;  %v2750_v4 = vld [vmem:[#allocation16 + $0x24] sm:$0xf] }
 0x411   : > { %1639 = vmatpush.bf16.msra.mxu0 %v2547_v63  ;;  %v2755_v63 = vld [vmem:[#allocation16 + $0x4c] sm:$0xf]  ;;  %v2443_v10 = vor.u32 %v2750_v4, %v2440_v5  ;;  %v2782_v4 = vld [vmem:[#allocation18 + $0x20] sm:$0xff] }
 0x412   : > { %1598 = vmatpush.bf16.msra.mxu1 %v2519_v3  ;;  %1612 = vmatpush.bf16.msrb.mxu2 %v2523_v7  ;;  %v2467_v1 = vor.u32 %v2755_v63, %v2464_v0  ;;  %v2752_v3 = vld [vmem:[#allocation16 + $0x2c] sm:$0xf0]  ;;  %v2446_v7 = vld [vmem:[#allocation16 + $0x28] sm:$0xf]  ;;  %v2801_v63 = vld [vmem:[#allocation18 + $0xb8] sm:$0xff] }
 0x413   : > { %v2439_v18 = vor.u32 %v2752_v3, %v2438_v2  ;;  %v2783_v0 = vld [vmem:[#allocation18 + $0x28] sm:$0xff]  ;;  %v2792_v2 = vld [vmem:[#allocation18 + $0x70] sm:$0xff] }
 0x414   : > { %v2800_v3 = vld [vmem:[#allocation18 + $0xb0] sm:$0xff]  ;;  %v2791_v5 = vld [vmem:[#allocation18 + $0x68] sm:$0xff] }
 0x415   : > { %1640 = vmatpush.bf16.msra.mxu0 %v2531_v11  ;;  %v2447_v11 = vor.u32 %v2753_v9, %v2446_v7  ;;  %v2799_v7 = vld [vmem:[#allocation18 + $0xa8] sm:$0xff]  ;;  %v2781_v9 = vld [vmem:[#allocation18 + $0x18] sm:$0xff] }
 0x472   : > { %v1257_v14 = vpop.xlane.xlu2 %1256 }
 0x473   : > { %2988 = vrcp.f32 %v1257_v14  ;;  %v2766_v14 = vld [vmem:[#allocation16 + $0xa4] sm:$0xf] }
 0x479   : > { %v2989_v21 = vpop.eup %2988 }
 0x47a   : > { %v1260_v13 = vpop.xlane.xlu0 %1259 }
 0x47b   : > { %v1187_v16 = vpop.xlane.xlu1 %1186  ;;  %2990 = vrcp.f32 %v1260_v13  ;;  %v2768_v13 = vld [vmem:[#allocation16 + $0xac] sm:$0xf0] }
 0x47c   : > { %2992 = vrcp.f32 %v1187_v16  ;;  %v2503_v16 = vor.u32 %v2768_v13, %v2502_v12  ;;  %v2751_v12 = vld [vmem:[#allocation16 + $0x2c] sm:$0xf]  ;;  %v2448_v13 = vld [vmem:[#allocation16 + $0x38] sm:$0xf0] }
 0x47e   : > { %1599 = vmatpush.bf16.msra.mxu1 %v2503_v16 }
 0x481   : > { %v2991_v23 = vpop.eup %2990 }
 0x482   : > { %v1190_v19 = vpop.xlane.xlu0 %1189  ;;  %v2993_v25 = vpop.eup %2992 }
 0x483   : > { %2994 = vrcp.f32 %v1190_v19  ;;  %v2510_v19 = vld [vmem:[#allocation16 + $0xa8] sm:$0xf] }
 0x489   : > { %v2995_v28 = vpop.eup %2994 }
 0x48b   : > { %v1278_v17 = vpop.f32.mrf.mxu3 }
 0x48c   : > { %v1285_v26 = vmul.f32 %v2989_v21, %v1278_v17  ;;  %v2504_v17 = vld [vmem:[#allocation16 + $0xb0] sm:$0xf0] }
 0x48d   : > { %v1205_v20 = vpop.f32.mrf.mxu0  ;;  %v2507_v21 = vor.u32 %v2766_v14, %v2504_v17  ;;  %v2422_v14 = vld [vmem:[#allocation16] sm:$0xf]  ;;  %v2451_v17 = vor.u32 %v2751_v12, %v2448_v13  ;;  %v2780_v12 = vld [vmem:[#allocation18 + $0x10] sm:$0xff] }
 0x48e   : > { %v1212_v30 = vmul.f32 %v2993_v25, %v1205_v20  ;;  %v2769_v20 = vld [vmem:[#allocation16 + $0xb4] sm:$0xf0]  ;;  %v2512_v25 = vld [vmem:[#allocation16 + $0xb8] sm:$0xf0]  ;;  %v2804_v13 = vld [vmem:[#allocation18 + $0xd0] sm:$0xff] }
 0x48f   : > { %1613 = vmatpush.bf16.msrb.mxu2 %v2507_v21  ;;  %v2424_v21 = vld [vmem:[#allocation16 + $0x10] sm:$0xf0] }
 0x493   : > { %v1280_v24 = vpop.f32.mrf.mxu3 }
 0x494   : > { %v1286_v27 = vmul.f32 %v2991_v23, %v1280_v24  ;;  %v2511_v23 = vor.u32 %v2769_v20, %v2510_v19  ;;  %v2767_v24 = vld [vmem:[#allocation16 + $0xac] sm:$0xf]  ;;  %v2748_v19 = vld [vmem:[#allocation16 + $0xc] sm:$0xf0]  ;;  %v2746_v20 = vld [vmem:[#allocation16 + $0x4] sm:$0xf] }
 0x495   : > { %v1207_v29 = vpop.f32.mrf.mxu0 }
 0x496   : > { %v1287_v31 = vpack.c.bf16 %v1286_v27, %v1285_v26  ;;  %v1213_v32 = vmul.f32 %v2995_v28, %v1207_v29  ;;  %v2515_v26 = vor.u32 %v2767_v24, %v2512_v25  ;;  %1627 = vmatpush.bf16.msrb.mxu3 %v2511_v23  ;;  %v2486_v27 = vld [vmem:[#allocation16 + $0x80] sm:$0xf]  ;;  %v2764_v28 = vld [vmem:[#allocation16 + $0x8c] sm:$0xf0]  ;;  %v2762_v29 = vld [vmem:[#allocation16 + $0x84] sm:$0xf]  ;;  %v2423_v23 = vor.u32 %v2748_v19, %v2422_v14 }
 0x497   : > { %v2427_v24 = vor.u32 %v2746_v20, %v2424_v21  ;;  %v2430_v25 = vld [vmem:[#allocation16 + $0x8] sm:$0xf]  ;;  %v2789_v14 = vld [vmem:[#allocation18 + $0x58] sm:$0xff]  ;;  %v2788_v21 = vld [vmem:[#allocation18 + $0x50] sm:$0xff] }
 0x498   : > { %v1214_v33 = vpack.c.bf16 %v1213_v32, %v1212_v30  ;;  %2402 = vmatmul.msk.bf16.vlgmr.msra.gmra.mxu3 %vm1150_vm8, %v1287_v31  ;;  %1641 = vmatpush.bf16.msra.mxu0 %v2515_v26  ;;  %v2487_v30 = vor.u32 %v2764_v28, %v2486_v27  ;;  %v2488_v31 = vld [vmem:[#allocation16 + $0x90] sm:$0xf0]  ;;  %v2494_v32 = vld [vmem:[#allocation16 + $0x88] sm:$0xf]  ;;  %v2749_v26 = vld [vmem:[#allocation16 + $0x14] sm:$0xf0] }
 0x499   : > { %v2747_v27 = vld [vmem:[#allocation16 + $0xc] sm:$0xf] }
 0x49a   : > { %2419 = vmatmul.msk.bf16.vlgmr.msrb.gmra.mxu0 %vm1150_vm8, %v1214_v33  ;;  %v2765_v33 = vld [vmem:[#allocation16 + $0x94] sm:$0xf0]  ;;  %1600 = vmatpush.bf16.msra.mxu1 %v2487_v30  ;;  %v2432_v30 = vld [vmem:[#allocation16 + $0x18] sm:$0xf0]  ;;  %v2779_v19 = vld [vmem:[#allocation18 + $0x8] sm:$0xff] }
 0x49b   : > { %v2803_v20 = vld [vmem:[#allocation18 + $0xc8] sm:$0xff] }
 0x517   : > { %v1365_v35 = vpop.f32.mrf.mxu0 }
 0x51b   : > { %v1324_v36 = vpop.f32.mrf.mxu3 }
 0x51c   : > { %v1366_v37 = vadd.f32 %v1365_v35, %v1324_v36  ;;  %v2491_v35 = vor.u32 %v2762_v29, %v2488_v31  ;;  %v2495_v36 = vor.u32 %v2765_v33, %v2494_v32  ;;  %v2431_v29 = vor.u32 %v2749_v26, %v2430_v25  ;;  %v2802_v25 = vld [vmem:[#allocation18 + $0xc0] sm:$0xff] }
 0x51d   : > { %v2435_v31 = vor.u32 %v2747_v27, %v2432_v30 }
 0x51e   : > { %v1370_v39 = vadd.f32 %v1366_v37, %v3723_v6  ;;  %v2763_v37 = vld [vmem:[#allocation16 + $0x8c] sm:$0xf]  ;;  %1614 = vmatpush.bf16.msrb.mxu2 %v2491_v35  ;;  %1628 = vmatpush.bf16.msrb.mxu3 %v2495_v36 }
 0x51f   : > { %v1367_v41 = vpop.f32.mrf.mxu0 }
 0x520   : > { %v3783_v40 = vadd.f32 %v2970_v38, %v1370_v39 }
 0x522   : > { %1377 = vadd.xlane.f32.xlu1 %v3783_v40 }
 0x523   : > { %v1326_v42 = vpop.f32.mrf.mxu3 }
 0x524   : > { %v1368_v43 = vadd.f32 %v1367_v41, %v1326_v42  ;;  %v2470_v41 = vld [vmem:[#allocation16 + $0x60] sm:$0xf]  ;;  %v2760_v42 = vld [vmem:[#allocation16 + $0x6c] sm:$0xf0] }
 0x526   : > { %v1371_v44 = vadd.f32 %v1368_v43, %v3726_v8  ;;  %v2758_v43 = vld [vmem:[#allocation16 + $0x64] sm:$0xf] }
 0x528   : > { %v3787_v45 = vadd.f32 %v2970_v38, %v1371_v44  ;;  %v2496_v38 = vld [vmem:[#allocation16 + $0x98] sm:$0xf0]  ;;  %v2471_v44 = vor.u32 %v2760_v42, %v2470_v41 }
 0x529   : > { %v2499_v39 = vor.u32 %v2763_v37, %v2496_v38 }
 0x52a   : > { %1379 = vadd.xlane.f32.xlu0 %v3787_v45  ;;  %1601 = vmatpush.bf16.msra.mxu1 %v2471_v44 }
 0x52b   : > { %1642 = vmatpush.bf16.msra.mxu0 %v2499_v39 }
 0x52e   : > { %1602 = vmatpush.bf16.msra.mxu1 %v2455_v57 }
 0x532   : > { %1603 = vmatpush.bf16.msra.mxu1 %v2439_v18  ;;  %v2806_v18 = vld [vmem:[#allocation18 + $0xe0] sm:$0xff] }
 0x536   : > { %1604 = vmatpush.bf16.msra.mxu1 %v2423_v23  ;;  %v2796_v23 = vld [vmem:[#allocation18 + $0x90] sm:$0xff] }
 0x595   : > { %v1378_v46 = vpop.xlane.xlu1 %1377 }
 0x596   : > { %v1381_v47 = vmul.f32 %v1378_v46, %v3729_v15  ;;  %v2472_v46 = vld [vmem:[#allocation16 + $0x70] sm:$0xf0] }
 0x598   : > { %v3792_v48 = vsub.f32 %v3783_v40, %v1381_v47  ;;  %v2478_v47 = vld [vmem:[#allocation16 + $0x68] sm:$0xf] }
 0x59a   : > { %v1385_v6 = vmul.f32 %v3792_v48, %v3792_v48 }
 0x59c   : > { %1387 = vadd.xlane.f32.xlu1 %v1385_v6  ;;  %v2761_v6 = vld [vmem:[#allocation16 + $0x74] sm:$0xf0] }
 0x59d   : > { %v1380_v49 = vpop.xlane.xlu0 %1379 }
 0x59e   : > { %v1382_v50 = vmul.f32 %v1380_v49, %v3729_v15  ;;  %v2475_v49 = vor.u32 %v2758_v43, %v2472_v46 }
 0x5a0   : > { %v3798_v51 = vsub.f32 %v3787_v45, %v1382_v50  ;;  %v2479_v50 = vor.u32 %v2761_v6, %v2478_v47  ;;  %1615 = vmatpush.bf16.msrb.mxu2 %v2475_v49 }
 0x5a2   : > { %v1386_v8 = vmul.f32 %v3798_v51, %v3798_v51  ;;  %1629 = vmatpush.bf16.msrb.mxu3 %v2479_v50  ;;  %v2971_v50 = vld [vmem:[%s3905_s10] ss:$0 sm:$0xff] }
 0x5a4   : > { %1389 = vadd.xlane.f32.xlu0 %v1386_v8  ;;  %v2759_v8 = vld [vmem:[#allocation16 + $0x6c] sm:$0xf]  ;;  %1616 = vmatpush.bf16.msrb.mxu2 %v2459_v61  ;;  %v2784_v61 = vld [vmem:[#allocation18 + $0x30] sm:$0xff] }
 0x5a5   : > { %v2483_v53 = vor.u32 %v2759_v8, %v2480_v52 }
 0x5a6   : > { %1630 = vmatpush.bf16.msrb.mxu3 %v2463_v62  ;;  %v2808_v62 = vld [vmem:[#allocation18 + $0xf0] sm:$0xff] }
 0x5a7   : > { %1643 = vmatpush.bf16.msra.mxu0 %v2483_v53 }
 0x5a8   : > { %1617 = vmatpush.bf16.msrb.mxu2 %v2443_v10  ;;  %v2790_v10 = vld [vmem:[#allocation18 + $0x60] sm:$0xff] }
 0x5aa   : > { %1631 = vmatpush.bf16.msrb.mxu3 %v2447_v11  ;;  %v2798_v11 = vld [vmem:[#allocation18 + $0xa0] sm:$0xff] }
 0x5ab   : > { %1644 = vmatpush.bf16.msra.mxu0 %v2467_v1  ;;  %v2807_v1 = vld [vmem:[#allocation18 + $0xe8] sm:$0xff] }
 0x5ac   : > { %1618 = vmatpush.bf16.msrb.mxu2 %v2427_v24  ;;  %v2778_v24 = vld [vmem:[#allocation18] sm:$0xff] }
 0x5ae   : > { %1632 = vmatpush.bf16.msrb.mxu3 %v2431_v29  ;;  %v2795_v29 = vld [vmem:[#allocation18 + $0x88] sm:$0xff] }
 0x5af   : > { %1645 = vmatpush.bf16.msra.mxu0 %v2451_v17  ;;  %v3815_v17 = vld [vmem:[%s3955_s8] sm:$0xf]  ;;  %s3344_s8 = sshra.s32 %s2104_s4, 4  ;;  %s3345_s8 = int_to_ptr.hbm [resolvable:$true] %s3344_s8 }
 0x5b0   : > { %v1429_v26 = vperm.slane %v3815_v17, 0  ;;  %v1432_v27 = vperm.slane %v3815_v17, 3  ;;  %s3346_s12 = scalar_lea.hbm %s3345_s8, 1  ;;  %p3351_p13 = scmp.lt.s32.totalorder %s3345_s8, %s3957_s26 }
 0x5b1   : > { %p3347_p1 = scmp.ne.s32.totalorder %s3345_s8, %s3346_s12 }
 0x5b2   : > { %1949 = vmatpush.bf16.msra.mxu3 %v2801_v63 }
 0x5b3   : > { %1646 = vmatpush.bf16.msra.mxu0 %v2435_v31  ;;  %p3348_p3 = pnand %p3347_p1, %p3661_p0 }
 0x5b5   : > { %p3349_p5 = pneg %p3348_p3 }
 0x5b6   : > { %1950 = vmatpush.bf16.msra.mxu3 %v2800_v3 }
 0x5b7   : > { %1963 = vmatpush.bf16.msrb.mxu0 %v2809_v60 }
 0x5ba   : > { %1951 = vmatpush.bf16.msra.mxu3 %v2799_v7 }
 0x5bb   : > { %1964 = vmatpush.bf16.msrb.mxu0 %v2808_v62 }
 0x5be   : > { %1952 = vmatpush.bf16.msra.mxu3 %v2798_v11 }
 0x5bf   : > { %1965 = vmatpush.bf16.msrb.mxu0 %v2807_v1 }
 0x5c3   : > { %1966 = vmatpush.bf16.msrb.mxu0 %v2806_v18 }
 0x60f   : > { %v1388_v22 = vpop.xlane.xlu1 %1387 }
 0x610   : > { %v1391_v16 = vmul.f32 %v1388_v22, %v3729_v15  ;;  %v2805_v22 = vld [vmem:[#allocation18 + $0xd8] sm:$0xff] }
 0x611   : > { %1967 = vmatpush.bf16.msrb.mxu0 %v2805_v22 }
 0x612   : > { %v1393_v28 = vadd.f32 1e-05, %v1391_v16  ;;  %v2797_v16 = vld [vmem:[#allocation18 + $0x98] sm:$0xff] }
 0x613   : > { %1953 = vmatpush.bf16.msra.mxu3 %v2797_v16 }
 0x614   : > { %2996 = vrsqrt.f32 %v1393_v28  ;;  %vm1401_vm11 = vweird.f32 %v1393_v28 }
 0x615   : > { %1968 = vmatpush.bf16.msrb.mxu0 %v2804_v13 }
 0x617   : > { %v1390_v32 = vpop.xlane.xlu0 %1389  ;;  %1954 = vmatpush.bf16.msra.mxu3 %v2796_v23 }
 0x618   : > { %v1392_v33 = vmul.f32 %v1390_v32, %v3729_v15 }
 0x619   : > { %1969 = vmatpush.bf16.msrb.mxu0 %v2803_v20 }
 0x61a   : > { %v2997_v35 = vpop.eup %2996  ;;  %v1394_v36 = vadd.f32 1e-05, %v1392_v33 }
 0x61b   : > { %v1396_v37 = vmul.f32 %v2997_v35, %v1393_v28  ;;  %vm1402_vm10 = vweird.f32 %v2997_v35  ;;  %v2787_v28 = vld [vmem:[#allocation18 + $0x48] sm:$0xff]  ;;  %1955 = vmatpush.bf16.msra.mxu3 %v2795_v29 }
 0x61c   : > { %2998 = vrsqrt.f32 %v1394_v36  ;;  %vm1403_vm12 = vmor %vm1401_vm11, %vm1402_vm10  ;;  %vm1411_vm14 = vweird.f32 %v1394_v36 }
 0x61d   : > { %v1397_v38 = vmul.f32 %v2997_v35, %v1396_v37  ;;  %1970 = vmatpush.bf16.msrb.mxu0 %v2802_v25  ;;  %v2786_v37 = vld [vmem:[#allocation18 + $0x40] sm:$0xff] }
 0x61f   : > { %v1398_v39 = vmul.f32 0.5, %v1397_v38  ;;  %v2794_v38 = vld [vmem:[#allocation18 + $0x80] sm:$0xff] }
 0x620   : > { %1956 = vmatpush.bf16.msra.mxu3 %v2794_v38 }
 0x621   : > { %v1399_v41 = vsub.f32 1.5, %v1398_v39 }
 0x622   : > { %v2999_v42 = vpop.eup %2998 }
 0x623   : > { %v1400_v43 = vmul.f32 %v2997_v35, %v1399_v41  ;;  %v1406_v44 = vmul.f32 %v2999_v42, %v1394_v36  ;;  %vm1412_vm13 = vweird.f32 %v2999_v42  ;;  %v1430_v36 = vperm.slane %v3815_v17, 1 }
 0x624   : > { %vm1413_vm15 = vmor %vm1411_vm14, %vm1412_vm13  ;;  %v1431_v41 = vperm.slane %v3815_v17, 2 }
 0x625   : > { %v1407_v46 = vmul.f32 %v2999_v42, %v1406_v44  ;;  %v1404_v47 = vsel %vm1403_vm12, %v2997_v35, %v1400_v43 }
 0x626   : > { %v1415_v15 = vmul.f32 %v1404_v47, %v3792_v48  ;;  %v2785_v48 = vld [vmem:[#allocation18 + $0x38] sm:$0xff] }
 0x627   : > { %v1408_v6 = vmul.f32 0.5, %v1407_v46  ;;  %1921 = vmatpush.bf16.msrb.mxu1 %v2785_v48 }
 0x628   : > { %v1420_v54 = vmul.f32 %v2971_v50, %v1415_v15 }
 0x629   : > { %v1409_v49 = vsub.f32 1.5, %v1408_v6 }
 0x62a   : > { %v1425_v57 = vadd.f32 %v2972_v55, %v1420_v54 }
 0x62b   : > { %v1410_v8 = vmul.f32 %v2999_v42, %v1409_v49  ;;  %1922 = vmatpush.bf16.msrb.mxu1 %v2784_v61 }
 0x62d   : > { %v1414_v52 = vsel %vm1413_vm15, %v2999_v42, %v1410_v8 }
 0x62e   : > { %v1416_v53 = vmul.f32 %v1414_v52, %v3798_v51  ;;  %v2793_v51 = vld [vmem:[#allocation18 + $0x78] sm:$0xff] }
 0x62f   : > { %1935 = vmatpush.bf16.msra.mxu2 %v2793_v51  ;;  %1923 = vmatpush.bf16.msrb.mxu1 %v2783_v0 }
 0x630   : > { %v1421_v56 = vmul.f32 %v2971_v50, %v1416_v53 }
 0x632   : > { %v1426_v58 = vadd.f32 %v2972_v55, %v1421_v56 }
 0x633   : > { %1936 = vmatpush.bf16.msra.mxu2 %v2792_v2  ;;  %1924 = vmatpush.bf16.msrb.mxu1 %v2782_v4 }
 0x634   : > { %v1427_v59 = vpack.c.bf16 %v1426_v58, %v1425_v57 }
 0x636   : > { %1605 = vmatmul.bf16.vlgmr.msra.gmra.mxu1 %v1427_v59  ;;  %1619 = vmatmul.bf16.vlgmr.msrb.gmra.mxu2 %v1427_v59 }
 0x637   : > { %1633 = vmatmul.bf16.vlgmr.msrb.gmra.mxu3 %v1427_v59  ;;  %1647 = vmatmul.bf16.vlgmr.msra.gmra.mxu0 %v1427_v59 }
 0x638   : > { %1937 = vmatpush.bf16.msra.mxu2 %v2791_v5  ;;  %1925 = vmatpush.bf16.msrb.mxu1 %v2781_v9 }
 0x63c   : > { %1938 = vmatpush.bf16.msra.mxu2 %v2790_v10  ;;  %1926 = vmatpush.bf16.msrb.mxu1 %v2780_v12 }
 0x640   : > { %1939 = vmatpush.bf16.msra.mxu2 %v2789_v14  ;;  %1927 = vmatpush.bf16.msrb.mxu1 %v2779_v19 }
 0x644   : > { %1940 = vmatpush.bf16.msra.mxu2 %v2788_v21  ;;  %1928 = vmatpush.bf16.msrb.mxu1 %v2778_v24 }
 0x648   : > { %1941 = vmatpush.bf16.msra.mxu2 %v2787_v28 }
 0x64c   : > { %1942 = vmatpush.bf16.msra.mxu2 %v2786_v37 }
 0x6b3   : > { %v1606_v30 = vpop.f32.mrf.mxu1 }
 0x6b4   : > { %v3819_v31 = vadd.f32 %v1606_v30, %v1429_v26  ;;  %v1648_v32 = vpop.f32.mrf.mxu0 }
 0x6b5   : > { %v3821_v33 = vadd.f32 %v1648_v32, %v1432_v27 }
 0x6b6   : > { %v1661_v35 = vmul.f32 0.044715, %v3819_v31  ;;  %v1653_v38 = vmul.f32 0.5, %v3819_v31 }
 0x6b7   : > { %v1664_v39 = vmul.f32 0.044715, %v3821_v33 }
 0x6b8   : > { %v1669_v42 = vmul.f32 %v1661_v35, %v3819_v31 }
 0x6b9   : > { %v1672_v43 = vmul.f32 %v1664_v39, %v3821_v33  ;;  %v1620_v44 = vpop.f32.mrf.mxu2 }
 0x6ba   : > { %v1677_v46 = vmul.f32 %v1669_v42, %v3819_v31  ;;  %v3830_v47 = vadd.f32 %v1620_v44, %v1430_v36  ;;  %v1634_v6 = vpop.f32.mrf.mxu3 }
 0x6bb   : > { %v1680_v49 = vmul.f32 %v1672_v43, %v3821_v33  ;;  %v3833_v15 = vadd.f32 %v1634_v6, %v1431_v41  ;;  %v1608_v50 = vpop.f32.mrf.mxu1  ;;  %v1656_v43 = vmul.f32 0.5, %v3821_v33 }
 0x6bc   : > { %v1685_v8 = vadd.f32 %v1677_v46, %v3819_v31  ;;  %v1662_v52 = vmul.f32 0.044715, %v3830_v47  ;;  %v1609_v53 = vadd.f32 %v1608_v50, %v1429_v26  ;;  %v1650_v54 = vpop.f32.mrf.mxu0  ;;  %v1654_v31 = vmul.f32 0.5, %v3830_v47 }
 0x6bd   : > { %v1688_v55 = vadd.f32 %v1680_v49, %v3821_v33  ;;  %v1663_v56 = vmul.f32 0.044715, %v3833_v15  ;;  %v1651_v57 = vadd.f32 %v1650_v54, %v1432_v27  ;;  %v1655_v33 = vmul.f32 0.5, %v3833_v15 }
 0x6be   : > { %v1670_v58 = vmul.f32 %v1662_v52, %v3830_v47  ;;  %v1665_v59 = vmul.f32 0.044715, %v1609_v53  ;;  %v1693_v61 = vmul.f32 0.7978846, %v1685_v8  ;;  %v1657_v39 = vmul.f32 0.5, %v1609_v53 }
 0x6bf   : > { %v1671_v48 = vmul.f32 %v1663_v56, %v3833_v15  ;;  %v1668_v60 = vmul.f32 0.044715, %v1651_v57  ;;  %v1696_v63 = vmul.f32 0.7978846, %v1688_v55  ;;  %v1660_v44 = vmul.f32 0.5, %v1651_v57 }
 0x6c0   : > { %v1678_v62 = vmul.f32 %v1670_v58, %v3830_v47  ;;  %v1673_v51 = vmul.f32 %v1665_v59, %v1609_v53  ;;  %3000 = vtanh.f32 %v1693_v61 }
 0x6c1   : > { %v1679_v0 = vmul.f32 %v1671_v48, %v3833_v15  ;;  %v1676_v1 = vmul.f32 %v1668_v60, %v1651_v57  ;;  %v1622_v2 = vpop.f32.mrf.mxu2  ;;  %3002 = vtanh.f32 %v1696_v63 }
 0x6c2   : > { %v1686_v3 = vadd.f32 %v1678_v62, %v3830_v47  ;;  %v1681_v4 = vmul.f32 %v1673_v51, %v1609_v53  ;;  %v1623_v18 = vadd.f32 %v1622_v2, %v1430_v36  ;;  %v1636_v5 = vpop.f32.mrf.mxu3 }
 0x6c3   : > { %v1687_v7 = vadd.f32 %v1679_v0, %v3833_v15  ;;  %v1684_v9 = vmul.f32 %v1676_v1, %v1651_v57  ;;  %v1637_v22 = vadd.f32 %v1636_v5, %v1431_v41  ;;  %v2816_v15 = vld [vmem:[#allocation19 + $0x30] sm:$0xff] }
 0x6c4   : > { %v1689_v10 = vadd.f32 %v1681_v4, %v1609_v53  ;;  %v1666_v11 = vmul.f32 0.044715, %v1623_v18  ;;  %v1694_v14 = vmul.f32 0.7978846, %v1686_v3  ;;  %v1658_v53 = vmul.f32 0.5, %v1623_v18 }
 0x6c5   : > { %v1692_v12 = vadd.f32 %v1684_v9, %v1651_v57  ;;  %v1667_v13 = vmul.f32 0.044715, %v1637_v22  ;;  %v1695_v19 = vmul.f32 0.7978846, %v1687_v7  ;;  %v1659_v57 = vmul.f32 0.5, %v1637_v22  ;;  %v2815_v7 = vld [vmem:[#allocation19 + $0x28] sm:$0xff] }
 0x6c6   : > { %v1697_v16 = vmul.f32 0.7978846, %v1689_v10  ;;  %v1674_v17 = vmul.f32 %v1666_v11, %v1623_v18  ;;  %v3001_v25 = vpop.eup %3000  ;;  %v3440_v3 = vmov 0.0  }
 0x6c7   : > { %v1700_v20 = vmul.f32 0.7978846, %v1692_v12  ;;  %v1675_v21 = vmul.f32 %v1667_v13, %v1637_v22  ;;  %v3003_v27 = vpop.eup %3002  ;;  %v1709_v32 = vadd.f32 1.0, %v3001_v25  ;;  %v2676_v4 = vsel %vm3755_vm9, 1.0, %v3440_v3  ;;  %v2814_v12 = vld [vmem:[#allocation19 + $0x20] sm:$0xff] }
 0x6c8   : > { %v1682_v23 = vmul.f32 %v1674_v17, %v1623_v18  ;;  %3004 = vtanh.f32 %v1697_v16  ;;  %v1712_v36 = vadd.f32 1.0, %v3003_v27  ;;  %v2004_v47 = vsel %vm737_vm0, %v2676_v4, 0.0  ;;  %v2973_v25 = vld [vmem:[%s3956_s5] ss:$0 sm:$0xff]  ;;  %s3350_s5 = scalar_lea.hbm %s3957_s26, 2 }
 0x6c9   : > { %v1683_v24 = vmul.f32 %v1675_v21, %v1637_v22  ;;  %3006 = vtanh.f32 %v1700_v20  ;;  %v1717_v49 = vmul.f32 %v1709_v32, %v1653_v38  ;;  %2005 = vadd.xlane.f32.xlu1 %v2004_v47  ;;  %v1986_v32 = vpack.c.bf16 %v2676_v4, %v2676_v4  ;;  %p3352_p7 = scmp.lt.s32.totalorder %s3350_s5, %s3346_s12 }
 0x6ca   : > { %v1690_v26 = vadd.f32 %v1682_v23, %v1623_v18  ;;  %3008 = vtanh.f32 %v1694_v14  ;;  %v1720_v8 = vmul.f32 %v1712_v36, %v1656_v43  ;;  %v2817_v18 = vld [vmem:[#allocation19 + $0x38] sm:$0xff]  ;;  %v2811_v36 = vld [vmem:[#allocation19 + $0x8] sm:$0xff] }
 0x6cb   : > { %v1691_v28 = vadd.f32 %v1683_v24, %v1637_v22  ;;  %3010 = vtanh.f32 %v1695_v19  ;;  %2076 = vmatpush.bf16.msrb.mxu2 %v2817_v18  ;;  %v2813_v14 = vld [vmem:[#allocation19 + $0x18] sm:$0xff]  ;;  %p3353_p8 = por %p3352_p7, %p3351_p13 }
 0x6cc   : > { %v1698_v29 = vmul.f32 0.7978846, %v1690_v26 }
 0x6cd   : > { %v1699_v30 = vmul.f32 0.7978846, %v1691_v28  ;;  %p3354_p9 = pnand %p3353_p8, %p3349_p5 }
 0x6ce   : > { %v3005_v35 = vpop.eup %3004  ;;  %3012 = vtanh.f32 %v1698_v29 }
 0x6cf   : > { %v3007_v37 = vpop.eup %3006  ;;  %v1713_v41 = vadd.f32 1.0, %v3005_v35  ;;  %3014 = vtanh.f32 %v1699_v30  ;;  %2077 = vmatpush.bf16.msrb.mxu2 %v2816_v15  ;;  %v2812_v35 = vld [vmem:[#allocation19 + $0x10] sm:$0xff] }
 0x6d0   : > { %v3009_v42 = vpop.eup %3008  ;;  %v1716_v46 = vadd.f32 1.0, %v3007_v37 }
 0x6d1   : > { %v3011_v6 = vpop.eup %3010  ;;  %v1721_v50 = vmul.f32 %v1713_v41, %v1657_v39  ;;  %v1710_v55 = vadd.f32 1.0, %v3009_v42 }
 0x6d2   : > { %v1724_v52 = vmul.f32 %v1716_v46, %v1660_v44  ;;  %v1711_v59 = vadd.f32 1.0, %v3011_v6  ;;  %v2027_v44 = vld [vmem:[%s3958_s28] sm:$0x1] }
 0x6d3   : > { %v1725_v54 = vpack.c.bf16 %v1721_v50, %v1717_v49  ;;  %v1718_v62 = vmul.f32 %v1710_v55, %v1654_v31  ;;  %2078 = vmatpush.bf16.msrb.mxu2 %v2815_v7 }
 0x6d4   : > { %v3013_v56 = vpop.eup %3012  ;;  %v1728_v58 = vpack.c.bf16 %v1724_v52, %v1720_v8  ;;  %v1719_v63 = vmul.f32 %v1711_v59, %v1655_v33 }
 0x6d5   : > { %v3015_v48 = vpop.eup %3014  ;;  %1929 = vmatmul.bf16.vlgmr.msrb.gmra.mxu1 %v1725_v54  ;;  %v1714_v60 = vadd.f32 1.0, %v3013_v56 }
 0x6d6   : > { %1971 = vmatmul.bf16.vlgmr.msrb.gmra.mxu0 %v1728_v58  ;;  %v1715_v61 = vadd.f32 1.0, %v3015_v48 }
 0x6d7   : > { %v1722_v51 = vmul.f32 %v1714_v60, %v1658_v53  ;;  %2079 = vmatpush.bf16.msrb.mxu2 %v2814_v12 }
 0x6d8   : > { %v1723_v0 = vmul.f32 %v1715_v61, %v1659_v57 }
 0x6d9   : > { %v1726_v1 = vpack.c.bf16 %v1722_v51, %v1718_v62 }
 0x6da   : > { %v1727_v2 = vpack.c.bf16 %v1723_v0, %v1719_v63 }
 0x6db   : > { %1943 = vmatmul.bf16.vlgmr.msra.gmra.mxu2 %v1726_v1 }
 0x6dc   : > { %1957 = vmatmul.bf16.vlgmr.msra.gmra.mxu3 %v1727_v2  ;;  %2080 = vmatpush.bf16.msrb.mxu2 %v2813_v14 }
 0x6e0   : > { %2081 = vmatpush.bf16.msrb.mxu2 %v2812_v35 }
 0x6e4   : > { %2082 = vmatpush.bf16.msrb.mxu2 %v2811_v36 }
 0x73c   : > { %v2006_v37 = vpop.xlane.xlu1 %2005 }
 0x73d   : > { %v2007_v38 = vmax.f32 %v2006_v37, 1.0 }
 0x73f   : > { %3016 = vrcp.f32 %v2007_v38 }
 0x745   : > { %v3017_v39 = vpop.eup %3016 }
 0x752   : > { %v1930_v5 = vpop.f32.mrf.mxu1 }
 0x753   : > { %v1972_v11 = vpop.f32.mrf.mxu0 }
 0x75a   : > { %v1932_v34 = vpop.f32.mrf.mxu1 }
 0x75b   : > { %v1974_v23 = vpop.f32.mrf.mxu0 }
 0x75e   : > { %v1944_v9 = vpop.f32.mrf.mxu2 }
 0x75f   : > { %v1945_v22 = vadd.f32 %v1944_v9, %v1930_v5  ;;  %v1958_v10 = vpop.f32.mrf.mxu3 }
 0x761   : > { %v1959_v13 = vadd.f32 %v1958_v10, %v1945_v22 }
 0x763   : > { %v1973_v17 = vadd.f32 %v1972_v11, %v1959_v13 }
 0x765   : > { %v1977_v24 = vadd.f32 %v1973_v17, %v3783_v40  ;;  %v2810_v40 = vld [vmem:[#allocation19] sm:$0xff] }
 0x766   : > { %v1946_v16 = vpop.f32.mrf.mxu2  ;;  %2083 = vmatpush.bf16.msrb.mxu2 %v2810_v40 }
 0x767   : > { %v1947_v19 = vadd.f32 %v1946_v16, %v1932_v34  ;;  %v1960_v20 = vpop.f32.mrf.mxu3  ;;  %v1982_v28 = vadd.f32 %v2973_v25, %v1977_v24 }
 0x769   : > { %v1961_v21 = vadd.f32 %v1960_v20, %v1947_v19 }
 0x76b   : > { %v1975_v26 = vadd.f32 %v1974_v23, %v1961_v21 }
 0x76d   : > { %v1978_v27 = vadd.f32 %v1975_v26, %v3787_v45 }
 0x76f   : > { %v1983_v29 = vadd.f32 %v2973_v25, %v1978_v27 }
 0x771   : > { %v1987_v30 = vpack.c.bf16 %v1983_v29, %v1982_v28 }
 0x773   : > { %1998 = vmatpush.bf16.msra.mxu1 %v1987_v30 }
 0x776   : > { %2677 = vmatmul.msk.bf16.vlgmr.msra.gmra.mxu1 %vm737_vm0, %v1986_v32 }
 0x7f3   : > { %v2000_v45 = vpop.f32.mrf.mxu1 }
 0x7f4   : > { %v2009_v41 = vmul.f32 %v3017_v39, %v2000_v45 }
 0x7f6   : > { %v2026_v42 = vpack.c.bf16 %v2009_v41, %v2009_v41 }
 0x7f8   : > { %2084 = vmatmul.bf16.vlgmr.msrb.gmra.mxu2 %v2026_v42 }
 0x7fb   : > { %v2002_v43 = vpop.f32.mrf.mxu1 }
 0x87b   : > { %v2085_v46 = vpop.f32.mrf.mxu2 }
 0x87c   : > { %v2086_v6 = vadd.f32 %v2085_v46, %v2027_v44 }
 0x87e   : > { %2089 = vst [vmem:[%s719_s30] sm:$0x1] %v2086_v6 }
 0x87f   : > { %3357 = shalt.err (!%p3354_p9)
}
 0x880   : > { %2856 = dma.vmem_to_hbm [thread:$0]  (%p3661_p0), %s2102_s11, 16, %s2104_s4, %s2091_s22  }
 0x883   : > { %v2087_v49 = vpop.f32.mrf.mxu2 }
 0x884 PF: > { %s2115_s17 = sand.u32 1, %s3406_s0   ;;  %p3959_p10 = scmp.ge.s32.totalorder %s3418_s20, 2 }
 0x885   : > { %s2116_s18 = scalar_lea.sflag [#allocation6], %s2115_s17 }
 0x886   : > { %p2891_p11 = pnand %p3959_p10, %p3667_p6 }
 0x888   : > { %p2892_p12 = pneg %p2891_p11 }
 0x88a   : > { %3401 = dma.done.wait (%p2892_p12), %s2116_s18, 16  }
 0x88b   : > { %3403 = vsyncadd (%p2892_p12), %s2116_s18, 4294967280  ;;  %p44_p2 = scmp.ge.s32.totalorder %s3637_s2, 4   ;;  %s3960_s0 = smov %s3410_s19 }
 0x88c   : > { %s3961_s19 = smov %s3414_s1  ;;  %s3962_s1 = smov %s3649_s15 }
 0x88d   : > { %s3963_s20 = smov %s3637_s2  ;;  %46 = sbr.rel (!%p44_p2) target bundleno = 36 (0x24), region = 169 }
 0x892   :  { %2121 = vsyncpa [#allocation5], 1 }
 0x893   :  { %2123 = vsyncpa [#allocation5 + $0x1], 1 }
 0x894   :  { %2124 = vsyncpa [#allocation8], 1 }
 0x895   :  { %2125 = vsyncpa [#allocation11], 1 }
 0x896   :  { %2126 = vsyncpa [#allocation14], 1 }
 0x897   :  { %2127 = vsyncpa [#allocation17], 1 }
 0x898   :  { %2128 = vsyncpa [#allocation20], 1 }
 0x899   :  { %2129 = vsyncpa [#allocation6], 1 }
 0x89a   :  { %2131 = vsyncpa [#allocation6 + $0x1], 1 }

</bundles_post_ra>
